<compile_context>
chip_gen: v5e
topology: v5e:2x2
jax: 0.10.0
libtpu: 0.0.40
codegen_flags: <defaults>
</compile_context>

<pallas_src>
import jax
import jax.numpy as jnp
from jax.experimental import pallas as pl
from jax.experimental.pallas import tpu as pltpu

# ----------------------------- problem sizes --------------------------------
STATE_C_PER_AGENT = 2
NUM_AGENTS = 2
C_IN = STATE_C_PER_AGENT * NUM_AGENTS      # conv1 in-channels = 4
H = W = 5                                  # required so that flatten size == 128
BATCH = 2
EPS = 1e-5

_KPOS = ((0, 0), (0, 1), (1, 0), (1, 1))   # (kh, kw) / (h, w) ordering
# flat-row shift for each kernel offset; flat row = (h*4 + w)*BATCH + n
_SHIFTS = tuple((kh * 4 + kw) * BATCH for kh, kw in _KPOS)          # (0, 2, 8, 10)

# -------------------------- slab A layout (128 lanes) -------------------------
_A_W2 = 0      # 16 rows; conv2 block i at lanes i*32:(i+1)*32   (Cin=16, Cout=32)
_A_W3 = 16     # 32 rows; conv3 block i at lanes i*32:(i+1)*32   (Cin=32, Cout=32)
_A_W1 = 48     # 16 rows, lanes 0:16  -- conv1 im2col weight (16, 16)
_A_FW0 = 48    # 4 rows,  lanes 64:128 -- fc0 weight (4, 64)
_A_FW1 = 64    # 64 rows, lanes 0:128  -- fc1 weight (64, 128)
_A_VEC = 128   # 8 rows: g1, be1, g2, be2, g3, be3, fb0, fb1
_A_ROWS = 136

# -------------------------- slab B layout (256 lanes) -------------------------
# rows 0:256   fc2 weight, row order [y(128) | pos00 | pos01 | pos10 | pos11]
_B_FB2 = 256   # 1 row: fc2 bias
_B_FW3 = 264   # 128 rows: fc3 weight halves, lanes 0:128 and 128:256
_B_TAIL = 392  # 1 row: lanes 0:128 = fc3 bias | lanes 128:256 = fc4 weight row
_B_FB4 = 393   # 1 row: lane 0 = fc4 bias
_B_ROWS = 400

_ACT_ROWS = 40   # rows 0:32 im2col (16 lanes), rows 32:34 action||comm (4 lanes)
_CBUF_ROWS = 48  # 32 activation rows + zero rows for the shifted window loads


# ------------------------------ kernel body ----------------------------------
def critic_kernel(act_ref, pa_ref, pb_hbm_ref, out_ref,
                  pbv, dma_sem, cbuf, lhs_buf):
    f32 = jnp.float32
    n_rows = 16 * BATCH                    # 32 flat activation rows

    # Kick off the fc2/fc3/fc4 weight DMA immediately; it overlaps the conv
    # tower + action branch and is waited on right before fc2.
    big_copy = pltpu.make_async_copy(pb_hbm_ref, pbv, dma_sem)
    big_copy.start()

    def avec(i, width):                    # (1, width) view of a packed vector row
        return pa_ref[_A_VEC + i:_A_VEC + i + 1, 0:width]

    # Static row-validity masks (flat row = (h*4 + w)*BATCH + n) with the
    # 1/count folded in, so BN means are a single masked reduction.
    row = jax.lax.broadcasted_iota(jnp.int32, (n_rows, 1), 0)
    pos = row >> 1                          # BATCH == 2
    hh = pos >> 2
    ww = pos & 3
    m2 = jnp.where((hh < 3) & (ww < 3), 1.0 / 18.0, 0.0).astype(f32)  # 18 valid rows
    m3 = jnp.where((hh < 2) & (ww < 2), 1.0 / 8.0, 0.0).astype(f32)   # 8 valid rows

    def bn_relu(a, mvec, g, b):
        # single-pass training-mode batch statistics (E[x], E[x^2] reductions
        # of independent operands overlap on the XLU)
        mean = jnp.sum(a * mvec, axis=0, keepdims=True)
        ex2 = jnp.sum(a * a * mvec, axis=0, keepdims=True)
        var = jnp.maximum(ex2 - mean * mean, 0.0)
        return jnp.maximum((a - mean) * jax.lax.rsqrt(var + EPS) * g + b, 0.0)

    # ---- conv tower on a flat (32, C) activation buffer -------------------
    cbuf[...] = jnp.zeros((_CBUF_ROWS, 32), f32)   # zero rows for window shifts

    # conv1: a single matmul (window extraction hoisted to the XLA wrapper).
    a1 = jnp.dot(act_ref[0:n_rows, 0:16], pa_ref[_A_W1:_A_W1 + 16, 0:16],
                 preferred_element_type=f32)                        # (32, 16)
    x1 = bn_relu(a1, 1.0 / n_rows, avec(0, 16), avec(1, 16))

    # conv2: 2x2 window = 4 shifted views of the flat buffer; the shifted views
    # are static-offset loads from the zero-padded staging buffer (no 4-D
    # reshape / relayout).  Conv bias is dropped: exactly cancelled by the
    # training-mode BatchNorm mean subtraction.
    cbuf[0:n_rows, 0:16] = x1
    t = [jnp.dot(x1 if d == 0 else cbuf[d:d + n_rows, 0:16],
                 pa_ref[_A_W2:_A_W2 + 16, i * 32:(i + 1) * 32],
                 preferred_element_type=f32)
         for i, d in enumerate(_SHIFTS)]
    a2 = (t[0] + t[1]) + (t[2] + t[3])                              # (32, 32)
    x2 = bn_relu(a2, m2, avec(2, 32), avec(3, 32))

    # conv3: same structure at 32 channels.
    cbuf[0:n_rows, 0:32] = x2
    u = [jnp.dot(x2 if d == 0 else cbuf[d:d + n_rows, 0:32],
                 pa_ref[_A_W3:_A_W3 + 32, i * 32:(i + 1) * 32],
                 preferred_element_type=f32)
         for i, d in enumerate(_SHIFTS)]
    a3 = (u[0] + u[1]) + (u[2] + u[3])                              # (32, 32)
    x3 = bn_relu(a3, m3, avec(4, 32), avec(5, 32))

    # ---- action / communication branch (fc0, fc1) --------------------------
    ac = act_ref[32:32 + BATCH, 0:2 * NUM_AGENTS]                   # (2, 4)
    y = jnp.maximum(
        jnp.dot(ac, pa_ref[_A_FW0:_A_FW0 + 2 * NUM_AGENTS, 64:128],
                preferred_element_type=f32) + avec(6, 64), 0.0)
    y = jnp.maximum(
        jnp.dot(y, pa_ref[_A_FW1:_A_FW1 + 64, 0:128],
                preferred_element_type=f32) + avec(7, 128), 0.0)

    # ---- fc2 as ONE K=256 matmul -------------------------------------------
    # LHS = [y | x3(0,0) | x3(0,1) | x3(1,0) | x3(1,1)]; the fc2 weight rows
    # were permuted to this order in pack_params, matching the module's
    # torch.cat([x_flat, y]) and the NCHW flatten index c*4 + h*2 + w.
    lhs_buf[0:BATCH, 0:128] = y
    lhs_buf[0:BATCH, 128:160] = x3[0:BATCH, :]          # pos (0,0): rows 0..1
    lhs_buf[0:BATCH, 160:192] = x3[2:2 + BATCH, :]      # pos (0,1): rows 2..3
    lhs_buf[0:BATCH, 192:224] = x3[8:8 + BATCH, :]      # pos (1,0): rows 8..9
    lhs_buf[0:BATCH, 224:256] = x3[10:10 + BATCH, :]    # pos (1,1): rows 10..11

    big_copy.wait()      # fc2/fc3/fc4 weights are now resident in VMEM

    z = jnp.maximum(
        jnp.dot(lhs_buf[0:BATCH, :], pbv[0:256, :],
                preferred_element_type=f32) + pbv[_B_FB2:_B_FB2 + 1, :], 0.0)

    # fc3: weight stored as two lane-side-by-side (128, 128) halves.
    z3 = (jnp.dot(z[:, 0:128], pbv[_B_FW3:_B_FW3 + 128, 0:128],
                  preferred_element_type=f32) +
          jnp.dot(z[:, 128:256], pbv[_B_FW3:_B_FW3 + 128, 128:256],
                  preferred_element_type=f32) +
          pbv[_B_TAIL:_B_TAIL + 1, 0:128])
    z3 = jnp.maximum(z3, 0.0)

    # fc4 (128 -> 1): multiply + lane reduction; the module applies relu to fc4
    # as well.  Output is broadcast to 128 lanes so the store is lane-dense;
    # the wrapper slices column 0.
    w4 = pbv[_B_TAIL:_B_TAIL + 1, 128:256]
    q = jnp.sum(z3 * w4, axis=1, keepdims=True) + pbv[_B_FB4:_B_FB4 + 1, 0:1]
    q = jnp.maximum(q, 0.0)
    out_ref[...] = jnp.broadcast_to(q, (BATCH, 128))


# ------------------------------ parameter packing ------------------------------
def pack_params(p):
    """Pack torch-layout parameters into two dense f32 slabs (A: 128-lane,
    B: 256-lane).  Every segment starts 8-row aligned."""
    f32 = jnp.float32
    A = jnp.zeros((_A_ROWS, 128), f32)
    # conv1 weight pre-packed for the wrapper-side im2col: rows idx*4 + cin.
    w1b = jnp.concatenate([p["w1"][:, :, kh, kw].T for kh, kw in _KPOS], axis=0)
    A = A.at[_A_W1:_A_W1 + 16, 0:16].set(w1b.astype(f32))
    # conv2 / conv3: per (kh, kw) a (Cin, Cout) block, side-by-side in lanes.
    for i, (kh, kw) in enumerate(_KPOS):
        A = A.at[_A_W2:_A_W2 + 16, i * 32:(i + 1) * 32].set(
            p["w2"][:, :, kh, kw].T.astype(f32))
        A = A.at[_A_W3:_A_W3 + 32, i * 32:(i + 1) * 32].set(
            p["w3"][:, :, kh, kw].T.astype(f32))
    A = A.at[_A_FW0:_A_FW0 + 2 * NUM_AGENTS, 64:128].set(p["fw0"].T.astype(f32))
    A = A.at[_A_FW1:_A_FW1 + 64, 0:128].set(p["fw1"].T.astype(f32))
    for i, key in enumerate(("g1", "be1", "g2", "be2", "g3", "be3", "fb0", "fb1")):
        v = p[key].astype(f32)
        A = A.at[_A_VEC + i, 0:v.shape[0]].set(v)

    B = jnp.zeros((_B_ROWS, 256), f32)
    fw2_t = p["fw2"].T.astype(f32)                       # (in=256, out=256)
    # torch fc2 input = cat([conv flatten (index c*4 + h*2 + w), y]); reorder
    # rows to the kernel LHS order [y | pos00 | pos01 | pos10 | pos11].
    B = B.at[0:128, :].set(fw2_t[128:256, :])
    for i, (h, w) in enumerate(_KPOS):
        rows = jnp.arange(32) * 4 + h * 2 + w
        B = B.at[128 + i * 32:128 + (i + 1) * 32, :].set(fw2_t[rows, :])
    B = B.at[_B_FB2, :].set(p["fb2"].astype(f32))
    fw3_t = p["fw3"].T.astype(f32)                       # (256, 128)
    B = B.at[_B_FW3:_B_FW3 + 128, 0:128].set(fw3_t[0:128, :])
    B = B.at[_B_FW3:_B_FW3 + 128, 128:256].set(fw3_t[128:256, :])
    B = B.at[_B_TAIL, 0:128].set(p["fb3"].astype(f32))
    B = B.at[_B_TAIL, 128:256].set(p["fw4"][0, :].astype(f32))
    B = B.at[_B_FB4, 0].set(p["fb4"][0].astype(f32))
    return A, B


def init_torch_params(key):
    def nrm(k, shape, scale=0.1):
        return scale * jax.random.normal(k, shape, dtype=jnp.float32)

    ks = jax.random.split(key, 22)
    return dict(
        w1=nrm(ks[0], (16, C_IN, 2, 2)),  b1=nrm(ks[1], (16,)),
        w2=nrm(ks[2], (32, 16, 2, 2)),    b2=nrm(ks[3], (32,)),
        w3=nrm(ks[4], (32, 32, 2, 2)),    b3=nrm(ks[5], (32,)),
        g1=1.0 + nrm(ks[6], (16,)),  be1=nrm(ks[7], (16,)),
        g2=1.0 + nrm(ks[8], (32,)),  be2=nrm(ks[9], (32,)),
        g3=1.0 + nrm(ks[10], (32,)), be3=nrm(ks[11], (32,)),
        fw0=nrm(ks[12], (64, 2 * NUM_AGENTS)), fb0=nrm(ks[13], (64,)),
        fw1=nrm(ks[14], (128, 64)),            fb1=nrm(ks[15], (128,)),
        fw2=nrm(ks[16], (256, 256)),           fb2=nrm(ks[17], (256,)),
        fw3=nrm(ks[18], (128, 256)),           fb3=nrm(ks[19], (128,)),
        fw4=nrm(ks[20], (1, 128)),             fb4=nrm(ks[21], (1,)),
    )


# ------------------------------ glue / wrapper --------------------------------
@jax.jit
def critic_forward(state_nchw, action, communication, slab_a, slab_b):
    n = state_nchw.shape[0]
    assert n == BATCH, "kernel is specialised for the replay mini-batch size"
    f32 = jnp.float32
    state_nhwc = jnp.transpose(state_nchw.astype(f32), (0, 2, 3, 1))      # (N,5,5,4)
    # conv1 window extraction (im2col) hoisted to XLA: row = (h*4 + w)*N + n,
    # col = kpos_index*C_IN + cin  -- matches the packed conv1 weight.
    cols = jnp.concatenate(
        [state_nhwc[:, kh:kh + 4, kw:kw + 4, :] for kh, kw in _KPOS], axis=-1)
    im2col = jnp.transpose(cols, (1, 2, 0, 3)).reshape(16 * n, 4 * C_IN)   # (32,16)
    ac = jnp.concatenate([action, communication], axis=-1).astype(f32)     # (N, 4)
    # single merged activation input
    act = jnp.zeros((_ACT_ROWS, 16), f32)
    act = act.at[0:16 * n, :].set(im2col)
    act = act.at[16 * n:16 * n + n, 0:2 * NUM_AGENTS].set(ac)

    out = pl.pallas_call(
        critic_kernel,
        out_shape=jax.ShapeDtypeStruct((n, 128), jnp.float32),
        in_specs=[
            pl.BlockSpec(memory_space=pltpu.MemorySpace.VMEM),   # activations
            pl.BlockSpec(memory_space=pltpu.MemorySpace.VMEM),   # slab A
            pl.BlockSpec(memory_space=pl.ANY),                   # slab B (manual DMA)
        ],
        out_specs=pl.BlockSpec(memory_space=pltpu.MemorySpace.VMEM),
        scratch_shapes=[
            pltpu.VMEM((_B_ROWS, 256), jnp.float32),     # slab B landing buffer
            pltpu.SemaphoreType.DMA,                     # its DMA semaphore
            pltpu.VMEM((_CBUF_ROWS, 32), jnp.float32),   # zero-padded activation buffer
            pltpu.VMEM((8, 256), jnp.float32),           # fc2 LHS staging
        ],
    )(act, slab_a, slab_b)
    return out[:, :1]       # real fc4 scalar lives in column 0


# --------------------------- pure-JAX reference -------------------------------
def critic_reference(state, action, communication, p):
    """Faithful forward of the torch module (training-mode BatchNorm)."""
    hi = jax.lax.Precision.HIGHEST

    def conv_bn_relu(x, w, b, g, be):
        y = jax.lax.conv_general_dilated(
            x, w, window_strides=(1, 1), padding="VALID",
            dimension_numbers=("NCHW", "OIHW", "NCHW"), precision=hi)
        y = y + b[None, :, None, None]
        mean = jnp.mean(y, axis=(0, 2, 3), keepdims=True)
        var = jnp.mean((y - mean) ** 2, axis=(0, 2, 3), keepdims=True)
        y = ((y - mean) * jax.lax.rsqrt(var + EPS) * g[None, :, None, None]
             + be[None, :, None, None])
        return jnp.maximum(y, 0.0)

    x = conv_bn_relu(state, p["w1"], p["b1"], p["g1"], p["be1"])
    x = conv_bn_relu(x, p["w2"], p["b2"], p["g2"], p["be2"])
    x = conv_bn_relu(x, p["w3"], p["b3"], p["g3"], p["be3"])
    xf = x.reshape(x.shape[0], -1)
    y = jnp.concatenate([action, communication], axis=-1)
    y = jnp.maximum(jnp.dot(y, p["fw0"].T, precision=hi) + p["fb0"], 0.0)
    y = jnp.maximum(jnp.dot(y, p["fw1"].T, precision=hi) + p["fb1"], 0.0)
    z = jnp.concatenate([xf, y], axis=-1)
    z = jnp.maximum(jnp.dot(z, p["fw2"].T, precision=hi) + p["fb2"], 0.0)
    z = jnp.maximum(jnp.dot(z, p["fw3"].T, precision=hi) + p["fb3"], 0.0)
    return jnp.maximum(jnp.dot(z, p["fw4"].T, precision=hi) + p["fb4"], 0.0)


if __name__ == "__main__":
    key = jax.random.PRNGKey(0)
    k_state, k_act, k_comm, k_par = jax.random.split(key, 4)

    state = jax.random.normal(k_state, (BATCH, C_IN, H, W), dtype=jnp.float32)  # NCHW
    action = jax.random.normal(k_act, (BATCH, NUM_AGENTS), dtype=jnp.float32)
    communication = jax.random.normal(k_comm, (BATCH, NUM_AGENTS), dtype=jnp.float32)
    params = init_torch_params(k_par)
    slab_a, slab_b = pack_params(params)

    out = jax.block_until_ready(
        critic_forward(state, action, communication, slab_a, slab_b))
    ref = jax.block_until_ready(
        critic_reference(state, action, communication, params))

    assert out.shape == (BATCH, 1), out.shape
    assert bool(jnp.all(jnp.isfinite(out))), "non-finite output"
    max_err = float(jnp.max(jnp.abs(out - ref)))
    tol = 2e-3 * (1.0 + float(jnp.max(jnp.abs(ref))))
    assert max_err <= tol, f"kernel/reference mismatch: {max_err} > {tol}"
    print("KERNEL_OK")
</pallas_src>

<mosaic_0001>
module attributes {stable_mosaic.version = 11 : i64} {
  func.func @critic_kernel(%arg0: memref<40x16xf32, #tpu.memory_space<vmem>>, %arg1: memref<136x128xf32, #tpu.memory_space<vmem>>, %arg2: memref<400x256xf32, #tpu.memory_space<any>>, %arg3: memref<2x128xf32, #tpu.memory_space<vmem>>, %arg4: memref<400x256xf32, #tpu.memory_space<vmem>>, %arg5: memref<!tpu.dma_semaphore, #tpu.memory_space<semaphore_mem>>, %arg6: memref<48x32xf32, #tpu.memory_space<vmem>>, %arg7: memref<8x256xf32, #tpu.memory_space<vmem>>) attributes {dimension_semantics = [], scalar_prefetch = 0 : i64, scratch_operands = 4 : i64, tpu.core_type = #tpu.core_type<tc>} {
    tpu.enqueue_dma source(%arg2 : memref<400x256xf32, #tpu.memory_space<any>>) target(%arg4 : memref<400x256xf32, #tpu.memory_space<vmem>>) target_semaphore(%arg5 : memref<!tpu.dma_semaphore, #tpu.memory_space<semaphore_mem>>)
    %0 = tpu.iota {dimensions = array<i32: 0>} : vector<32x1xi32>
    %c1_i32 = arith.constant 1 : i32
    %1 = vector.broadcast %c1_i32 : i32 to vector<32x1xi32>
    %2 = arith.shrsi %0, %1 : vector<32x1xi32>
    %c2_i32 = arith.constant 2 : i32
    %3 = vector.broadcast %c2_i32 : i32 to vector<32x1xi32>
    %4 = arith.shrsi %2, %3 : vector<32x1xi32>
    %c3_i32 = arith.constant 3 : i32
    %5 = vector.broadcast %c3_i32 : i32 to vector<32x1xi32>
    %6 = arith.andi %2, %5 : vector<32x1xi32>
    %c3_i32_0 = arith.constant 3 : i32
    %7 = vector.broadcast %c3_i32_0 : i32 to vector<32x1xi32>
    %8 = arith.cmpi slt, %4, %7 : vector<32x1xi32>
    %c3_i32_1 = arith.constant 3 : i32
    %9 = vector.broadcast %c3_i32_1 : i32 to vector<32x1xi32>
    %10 = arith.cmpi slt, %6, %9 : vector<32x1xi32>
    %11 = arith.andi %8, %10 : vector<32x1xi1>
    %cst = arith.constant 0.055555556 : f32
    %cst_2 = arith.constant 0.000000e+00 : f32
    %12 = vector.broadcast %cst : f32 to vector<32x1xf32>
    %13 = vector.broadcast %cst_2 : f32 to vector<32x1xf32>
    %14 = arith.select %11, %12, %13 : vector<32x1xi1>, vector<32x1xf32>
    %c2_i32_3 = arith.constant 2 : i32
    %15 = vector.broadcast %c2_i32_3 : i32 to vector<32x1xi32>
    %16 = arith.cmpi slt, %4, %15 : vector<32x1xi32>
    %c2_i32_4 = arith.constant 2 : i32
    %17 = vector.broadcast %c2_i32_4 : i32 to vector<32x1xi32>
    %18 = arith.cmpi slt, %6, %17 : vector<32x1xi32>
    %19 = arith.andi %16, %18 : vector<32x1xi1>
    %cst_5 = arith.constant 1.250000e-01 : f32
    %cst_6 = arith.constant 0.000000e+00 : f32
    %20 = vector.broadcast %cst_5 : f32 to vector<32x1xf32>
    %21 = vector.broadcast %cst_6 : f32 to vector<32x1xf32>
    %22 = arith.select %19, %20, %21 : vector<32x1xi1>, vector<32x1xf32>
    %cst_7 = arith.constant 0.000000e+00 : f32
    %23 = vector.broadcast %cst_7 : f32 to vector<48x32xf32>
    %c0 = arith.constant 0 : index
    %c0_8 = arith.constant 0 : index
    %24 = vector.load %arg6[%c0, %c0_8] : memref<48x32xf32, #tpu.memory_space<vmem>>, vector<48x32xf32>
    tpu.vector_store %arg6[%c0, %c0_8], %23 {strides = array<i32>} : memref<48x32xf32, #tpu.memory_space<vmem>>, vector<48x32xf32>,
    %c0_9 = arith.constant 0 : index
    %c0_10 = arith.constant 0 : index
    %25 = vector.load %arg0[%c0_9, %c0_10] : memref<40x16xf32, #tpu.memory_space<vmem>>, vector<32x16xf32>
    %c48 = arith.constant 48 : index
    %c0_11 = arith.constant 0 : index
    %26 = vector.load %arg1[%c48, %c0_11] : memref<136x128xf32, #tpu.memory_space<vmem>>, vector<16x16xf32>
    %cst_12 = arith.constant dense<0.000000e+00> : vector<32x16xf32>
    %27 = tpu.matmul %25, %26, %cst_12 {dimension_numbers = #tpu.dot_dimension_numbers<[1], [0], [0], [1], [0, 0, 1, 1], [], []>} : vector<32x16xf32>, vector<16x16xf32>, vector<32x16xf32> -> vector<32x16xf32>
    %c128 = arith.constant 128 : index
    %c0_13 = arith.constant 0 : index
    %28 = vector.load %arg1[%c128, %c0_13] : memref<136x128xf32, #tpu.memory_space<vmem>>, vector<1x16xf32>
    %c129 = arith.constant 129 : index
    %c0_14 = arith.constant 0 : index
    %29 = vector.load %arg1[%c129, %c0_14] : memref<136x128xf32, #tpu.memory_space<vmem>>, vector<1x16xf32>
    %cst_15 = arith.constant 3.125000e-02 : f32
    %30 = vector.broadcast %cst_15 : f32 to vector<32x16xf32>
    %31 = arith.mulf %27, %30 : vector<32x16xf32>
    %cst_16 = arith.constant dense<0.000000e+00> : vector<16xf32>
    %32 = vector.multi_reduction <add>, %31, %cst_16 [0] : vector<32x16xf32> to vector<16xf32>
    %33 = vector.shape_cast %32 : vector<16xf32> to vector<1x16xf32>
    %34 = arith.mulf %27, %27 : vector<32x16xf32>
    %cst_17 = arith.constant 3.125000e-02 : f32
    %35 = vector.broadcast %cst_17 : f32 to vector<32x16xf32>
    %36 = arith.mulf %34, %35 : vector<32x16xf32>
    %cst_18 = arith.constant dense<0.000000e+00> : vector<16xf32>
    %37 = vector.multi_reduction <add>, %36, %cst_18 [0] : vector<32x16xf32> to vector<16xf32>
    %38 = vector.shape_cast %37 : vector<16xf32> to vector<1x16xf32>
    %39 = arith.mulf %33, %33 : vector<1x16xf32>
    %40 = arith.subf %38, %39 : vector<1x16xf32>
    %cst_19 = arith.constant 0.000000e+00 : f32
    %41 = vector.broadcast %cst_19 : f32 to vector<1x16xf32>
    %42 = arith.maximumf %40, %41 : vector<1x16xf32>
    %43 = vector.broadcast %33 : vector<1x16xf32> to vector<32x16xf32>
    %44 = arith.subf %27, %43 : vector<32x16xf32>
    %cst_20 = arith.constant 9.99999974E-6 : f32
    %45 = vector.broadcast %cst_20 : f32 to vector<1x16xf32>
    %46 = arith.addf %42, %45 : vector<1x16xf32>
    %47 = math.rsqrt %46 : vector<1x16xf32>
    %48 = vector.broadcast %47 : vector<1x16xf32> to vector<32x16xf32>
    %49 = arith.mulf %44, %48 : vector<32x16xf32>
    %50 = vector.broadcast %28 : vector<1x16xf32> to vector<32x16xf32>
    %51 = arith.mulf %49, %50 : vector<32x16xf32>
    %52 = vector.broadcast %29 : vector<1x16xf32> to vector<32x16xf32>
    %53 = arith.addf %51, %52 : vector<32x16xf32>
    %cst_21 = arith.constant 0.000000e+00 : f32
    %54 = vector.broadcast %cst_21 : f32 to vector<32x16xf32>
    %55 = arith.maximumf %53, %54 : vector<32x16xf32>
    %c0_22 = arith.constant 0 : index
    %c0_23 = arith.constant 0 : index
    %56 = vector.load %arg6[%c0_22, %c0_23] : memref<48x32xf32, #tpu.memory_space<vmem>>, vector<32x16xf32>
    tpu.vector_store %arg6[%c0_22, %c0_23], %55 {strides = array<i32>} : memref<48x32xf32, #tpu.memory_space<vmem>>, vector<32x16xf32>,
    %c0_24 = arith.constant 0 : index
    %c0_25 = arith.constant 0 : index
    %57 = vector.load %arg1[%c0_24, %c0_25] : memref<136x128xf32, #tpu.memory_space<vmem>>, vector<16x32xf32>
    %cst_26 = arith.constant dense<0.000000e+00> : vector<32x32xf32>
    %58 = tpu.matmul %55, %57, %cst_26 {dimension_numbers = #tpu.dot_dimension_numbers<[1], [0], [0], [1], [0, 0, 1, 1], [], []>} : vector<32x16xf32>, vector<16x32xf32>, vector<32x32xf32> -> vector<32x32xf32>
    %c2 = arith.constant 2 : index
    %c0_27 = arith.constant 0 : index
    %59 = vector.load %arg6[%c2, %c0_27] : memref<48x32xf32, #tpu.memory_space<vmem>>, vector<32x16xf32>
    %c0_28 = arith.constant 0 : index
    %c32 = arith.constant 32 : index
    %60 = vector.load %arg1[%c0_28, %c32] : memref<136x128xf32, #tpu.memory_space<vmem>>, vector<16x32xf32>
    %cst_29 = arith.constant dense<0.000000e+00> : vector<32x32xf32>
    %61 = tpu.matmul %59, %60, %cst_29 {dimension_numbers = #tpu.dot_dimension_numbers<[1], [0], [0], [1], [0, 0, 1, 1], [], []>} : vector<32x16xf32>, vector<16x32xf32>, vector<32x32xf32> -> vector<32x32xf32>
    %c8 = arith.constant 8 : index
    %c0_30 = arith.constant 0 : index
    %62 = vector.load %arg6[%c8, %c0_30] : memref<48x32xf32, #tpu.memory_space<vmem>>, vector<32x16xf32>
    %c0_31 = arith.constant 0 : index
    %c64 = arith.constant 64 : index
    %63 = vector.load %arg1[%c0_31, %c64] : memref<136x128xf32, #tpu.memory_space<vmem>>, vector<16x32xf32>
    %cst_32 = arith.constant dense<0.000000e+00> : vector<32x32xf32>
    %64 = tpu.matmul %62, %63, %cst_32 {dimension_numbers = #tpu.dot_dimension_numbers<[1], [0], [0], [1], [0, 0, 1, 1], [], []>} : vector<32x16xf32>, vector<16x32xf32>, vector<32x32xf32> -> vector<32x32xf32>
    %c10 = arith.constant 10 : index
    %c0_33 = arith.constant 0 : index
    %65 = vector.load %arg6[%c10, %c0_33] : memref<48x32xf32, #tpu.memory_space<vmem>>, vector<32x16xf32>
    %c0_34 = arith.constant 0 : index
    %c96 = arith.constant 96 : index
    %66 = vector.load %arg1[%c0_34, %c96] : memref<136x128xf32, #tpu.memory_space<vmem>>, vector<16x32xf32>
    %cst_35 = arith.constant dense<0.000000e+00> : vector<32x32xf32>
    %67 = tpu.matmul %65, %66, %cst_35 {dimension_numbers = #tpu.dot_dimension_numbers<[1], [0], [0], [1], [0, 0, 1, 1], [], []>} : vector<32x16xf32>, vector<16x32xf32>, vector<32x32xf32> -> vector<32x32xf32>
    %68 = arith.addf %58, %61 : vector<32x32xf32>
    %69 = arith.addf %64, %67 : vector<32x32xf32>
    %70 = arith.addf %68, %69 : vector<32x32xf32>
    %c130 = arith.constant 130 : index
    %c0_36 = arith.constant 0 : index
    %71 = vector.load %arg1[%c130, %c0_36] : memref<136x128xf32, #tpu.memory_space<vmem>>, vector<1x32xf32>
    %c131 = arith.constant 131 : index
    %c0_37 = arith.constant 0 : index
    %72 = vector.load %arg1[%c131, %c0_37] : memref<136x128xf32, #tpu.memory_space<vmem>>, vector<1x32xf32>
    %73 = vector.broadcast %14 : vector<32x1xf32> to vector<32x32xf32>
    %74 = arith.mulf %70, %73 : vector<32x32xf32>
    %cst_38 = arith.constant dense<0.000000e+00> : vector<32xf32>
    %75 = vector.multi_reduction <add>, %74, %cst_38 [0] : vector<32x32xf32> to vector<32xf32>
    %76 = vector.shape_cast %75 : vector<32xf32> to vector<1x32xf32>
    %77 = arith.mulf %70, %70 : vector<32x32xf32>
    %78 = vector.broadcast %14 : vector<32x1xf32> to vector<32x32xf32>
    %79 = arith.mulf %77, %78 : vector<32x32xf32>
    %cst_39 = arith.constant dense<0.000000e+00> : vector<32xf32>
    %80 = vector.multi_reduction <add>, %79, %cst_39 [0] : vector<32x32xf32> to vector<32xf32>
    %81 = vector.shape_cast %80 : vector<32xf32> to vector<1x32xf32>
    %82 = arith.mulf %76, %76 : vector<1x32xf32>
    %83 = arith.subf %81, %82 : vector<1x32xf32>
    %cst_40 = arith.constant 0.000000e+00 : f32
    %84 = vector.broadcast %cst_40 : f32 to vector<1x32xf32>
    %85 = arith.maximumf %83, %84 : vector<1x32xf32>
    %86 = vector.broadcast %76 : vector<1x32xf32> to vector<32x32xf32>
    %87 = arith.subf %70, %86 : vector<32x32xf32>
    %cst_41 = arith.constant 9.99999974E-6 : f32
    %88 = vector.broadcast %cst_41 : f32 to vector<1x32xf32>
    %89 = arith.addf %85, %88 : vector<1x32xf32>
    %90 = math.rsqrt %89 : vector<1x32xf32>
    %91 = vector.broadcast %90 : vector<1x32xf32> to vector<32x32xf32>
    %92 = arith.mulf %87, %91 : vector<32x32xf32>
    %93 = vector.broadcast %71 : vector<1x32xf32> to vector<32x32xf32>
    %94 = arith.mulf %92, %93 : vector<32x32xf32>
    %95 = vector.broadcast %72 : vector<1x32xf32> to vector<32x32xf32>
    %96 = arith.addf %94, %95 : vector<32x32xf32>
    %cst_42 = arith.constant 0.000000e+00 : f32
    %97 = vector.broadcast %cst_42 : f32 to vector<32x32xf32>
    %98 = arith.maximumf %96, %97 : vector<32x32xf32>
    %c0_43 = arith.constant 0 : index
    %c0_44 = arith.constant 0 : index
    %99 = vector.load %arg6[%c0_43, %c0_44] : memref<48x32xf32, #tpu.memory_space<vmem>>, vector<32x32xf32>
    tpu.vector_store %arg6[%c0_43, %c0_44], %98 {strides = array<i32>} : memref<48x32xf32, #tpu.memory_space<vmem>>, vector<32x32xf32>,
    %c16 = arith.constant 16 : index
    %c0_45 = arith.constant 0 : index
    %100 = vector.load %arg1[%c16, %c0_45] : memref<136x128xf32, #tpu.memory_space<vmem>>, vector<32x32xf32>
    %cst_46 = arith.constant dense<0.000000e+00> : vector<32x32xf32>
    %101 = tpu.matmul %98, %100, %cst_46 {dimension_numbers = #tpu.dot_dimension_numbers<[1], [0], [0], [1], [0, 0, 1, 1], [], []>} : vector<32x32xf32>, vector<32x32xf32>, vector<32x32xf32> -> vector<32x32xf32>
    %c2_47 = arith.constant 2 : index
    %c0_48 = arith.constant 0 : index
    %102 = vector.load %arg6[%c2_47, %c0_48] : memref<48x32xf32, #tpu.memory_space<vmem>>, vector<32x32xf32>
    %c16_49 = arith.constant 16 : index
    %c32_50 = arith.constant 32 : index
    %103 = vector.load %arg1[%c16_49, %c32_50] : memref<136x128xf32, #tpu.memory_space<vmem>>, vector<32x32xf32>
    %cst_51 = arith.constant dense<0.000000e+00> : vector<32x32xf32>
    %104 = tpu.matmul %102, %103, %cst_51 {dimension_numbers = #tpu.dot_dimension_numbers<[1], [0], [0], [1], [0, 0, 1, 1], [], []>} : vector<32x32xf32>, vector<32x32xf32>, vector<32x32xf32> -> vector<32x32xf32>
    %c8_52 = arith.constant 8 : index
    %c0_53 = arith.constant 0 : index
    %105 = vector.load %arg6[%c8_52, %c0_53] : memref<48x32xf32, #tpu.memory_space<vmem>>, vector<32x32xf32>
    %c16_54 = arith.constant 16 : index
    %c64_55 = arith.constant 64 : index
    %106 = vector.load %arg1[%c16_54, %c64_55] : memref<136x128xf32, #tpu.memory_space<vmem>>, vector<32x32xf32>
    %cst_56 = arith.constant dense<0.000000e+00> : vector<32x32xf32>
    %107 = tpu.matmul %105, %106, %cst_56 {dimension_numbers = #tpu.dot_dimension_numbers<[1], [0], [0], [1], [0, 0, 1, 1], [], []>} : vector<32x32xf32>, vector<32x32xf32>, vector<32x32xf32> -> vector<32x32xf32>
    %c10_57 = arith.constant 10 : index
    %c0_58 = arith.constant 0 : index
    %108 = vector.load %arg6[%c10_57, %c0_58] : memref<48x32xf32, #tpu.memory_space<vmem>>, vector<32x32xf32>
    %c16_59 = arith.constant 16 : index
    %c96_60 = arith.constant 96 : index
    %109 = vector.load %arg1[%c16_59, %c96_60] : memref<136x128xf32, #tpu.memory_space<vmem>>, vector<32x32xf32>
    %cst_61 = arith.constant dense<0.000000e+00> : vector<32x32xf32>
    %110 = tpu.matmul %108, %109, %cst_61 {dimension_numbers = #tpu.dot_dimension_numbers<[1], [0], [0], [1], [0, 0, 1, 1], [], []>} : vector<32x32xf32>, vector<32x32xf32>, vector<32x32xf32> -> vector<32x32xf32>
    %111 = arith.addf %101, %104 : vector<32x32xf32>
    %112 = arith.addf %107, %110 : vector<32x32xf32>
    %113 = arith.addf %111, %112 : vector<32x32xf32>
    %c132 = arith.constant 132 : index
    %c0_62 = arith.constant 0 : index
    %114 = vector.load %arg1[%c132, %c0_62] : memref<136x128xf32, #tpu.memory_space<vmem>>, vector<1x32xf32>
    %c133 = arith.constant 133 : index
    %c0_63 = arith.constant 0 : index
    %115 = vector.load %arg1[%c133, %c0_63] : memref<136x128xf32, #tpu.memory_space<vmem>>, vector<1x32xf32>
    %116 = vector.broadcast %22 : vector<32x1xf32> to vector<32x32xf32>
    %117 = arith.mulf %113, %116 : vector<32x32xf32>
    %cst_64 = arith.constant dense<0.000000e+00> : vector<32xf32>
    %118 = vector.multi_reduction <add>, %117, %cst_64 [0] : vector<32x32xf32> to vector<32xf32>
    %119 = vector.shape_cast %118 : vector<32xf32> to vector<1x32xf32>
    %120 = arith.mulf %113, %113 : vector<32x32xf32>
    %121 = vector.broadcast %22 : vector<32x1xf32> to vector<32x32xf32>
    %122 = arith.mulf %120, %121 : vector<32x32xf32>
    %cst_65 = arith.constant dense<0.000000e+00> : vector<32xf32>
    %123 = vector.multi_reduction <add>, %122, %cst_65 [0] : vector<32x32xf32> to vector<32xf32>
    %124 = vector.shape_cast %123 : vector<32xf32> to vector<1x32xf32>
    %125 = arith.mulf %119, %119 : vector<1x32xf32>
    %126 = arith.subf %124, %125 : vector<1x32xf32>
    %cst_66 = arith.constant 0.000000e+00 : f32
    %127 = vector.broadcast %cst_66 : f32 to vector<1x32xf32>
    %128 = arith.maximumf %126, %127 : vector<1x32xf32>
    %129 = vector.broadcast %119 : vector<1x32xf32> to vector<32x32xf32>
    %130 = arith.subf %113, %129 : vector<32x32xf32>
    %cst_67 = arith.constant 9.99999974E-6 : f32
    %131 = vector.broadcast %cst_67 : f32 to vector<1x32xf32>
    %132 = arith.addf %128, %131 : vector<1x32xf32>
    %133 = math.rsqrt %132 : vector<1x32xf32>
    %134 = vector.broadcast %133 : vector<1x32xf32> to vector<32x32xf32>
    %135 = arith.mulf %130, %134 : vector<32x32xf32>
    %136 = vector.broadcast %114 : vector<1x32xf32> to vector<32x32xf32>
    %137 = arith.mulf %135, %136 : vector<32x32xf32>
    %138 = vector.broadcast %115 : vector<1x32xf32> to vector<32x32xf32>
    %139 = arith.addf %137, %138 : vector<32x32xf32>
    %cst_68 = arith.constant 0.000000e+00 : f32
    %140 = vector.broadcast %cst_68 : f32 to vector<32x32xf32>
    %141 = arith.maximumf %139, %140 : vector<32x32xf32>
    %c32_69 = arith.constant 32 : index
    %c0_70 = arith.constant 0 : index
    %142 = vector.load %arg0[%c32_69, %c0_70] : memref<40x16xf32, #tpu.memory_space<vmem>>, vector<2x4xf32>
    %c48_71 = arith.constant 48 : index
    %c64_72 = arith.constant 64 : index
    %143 = vector.load %arg1[%c48_71, %c64_72] : memref<136x128xf32, #tpu.memory_space<vmem>>, vector<4x64xf32>
    %cst_73 = arith.constant dense<0.000000e+00> : vector<2x64xf32>
    %144 = tpu.matmul %142, %143, %cst_73 {dimension_numbers = #tpu.dot_dimension_numbers<[1], [0], [0], [1], [0, 0, 1, 1], [], []>} : vector<2x4xf32>, vector<4x64xf32>, vector<2x64xf32> -> vector<2x64xf32>
    %c134 = arith.constant 134 : index
    %c0_74 = arith.constant 0 : index
    %145 = vector.load %arg1[%c134, %c0_74] : memref<136x128xf32, #tpu.memory_space<vmem>>, vector<1x64xf32>
    %146 = vector.broadcast %145 : vector<1x64xf32> to vector<2x64xf32>
    %147 = arith.addf %144, %146 : vector<2x64xf32>
    %cst_75 = arith.constant 0.000000e+00 : f32
    %148 = vector.broadcast %cst_75 : f32 to vector<2x64xf32>
    %149 = arith.maximumf %147, %148 : vector<2x64xf32>
    %c64_76 = arith.constant 64 : index
    %c0_77 = arith.constant 0 : index
    %150 = vector.load %arg1[%c64_76, %c0_77] : memref<136x128xf32, #tpu.memory_space<vmem>>, vector<64x128xf32>
    %cst_78 = arith.constant dense<0.000000e+00> : vector<2x128xf32>
    %151 = tpu.matmul %149, %150, %cst_78 {dimension_numbers = #tpu.dot_dimension_numbers<[1], [0], [0], [1], [0, 0, 1, 1], [], []>} : vector<2x64xf32>, vector<64x128xf32>, vector<2x128xf32> -> vector<2x128xf32>
    %c135 = arith.constant 135 : index
    %c0_79 = arith.constant 0 : index
    %152 = vector.load %arg1[%c135, %c0_79] : memref<136x128xf32, #tpu.memory_space<vmem>>, vector<1x128xf32>
    %153 = vector.broadcast %152 : vector<1x128xf32> to vector<2x128xf32>
    %154 = arith.addf %151, %153 : vector<2x128xf32>
    %cst_80 = arith.constant 0.000000e+00 : f32
    %155 = vector.broadcast %cst_80 : f32 to vector<2x128xf32>
    %156 = arith.maximumf %154, %155 : vector<2x128xf32>
    %c0_81 = arith.constant 0 : index
    %c0_82 = arith.constant 0 : index
    %157 = vector.load %arg7[%c0_81, %c0_82] : memref<8x256xf32, #tpu.memory_space<vmem>>, vector<2x128xf32>
    tpu.vector_store %arg7[%c0_81, %c0_82], %156 {strides = array<i32>} : memref<8x256xf32, #tpu.memory_space<vmem>>, vector<2x128xf32>,
    %158 = vector.extract_strided_slice %141 {offsets = [0, 0], sizes = [2, 32], strides = [1, 1]} : vector<32x32xf32> to vector<2x32xf32>
    %c0_83 = arith.constant 0 : index
    %c128_84 = arith.constant 128 : index
    %159 = vector.load %arg7[%c0_83, %c128_84] : memref<8x256xf32, #tpu.memory_space<vmem>>, vector<2x32xf32>
    tpu.vector_store %arg7[%c0_83, %c128_84], %158 {strides = array<i32>} : memref<8x256xf32, #tpu.memory_space<vmem>>, vector<2x32xf32>,
    %160 = vector.extract_strided_slice %141 {offsets = [2, 0], sizes = [2, 32], strides = [1, 1]} : vector<32x32xf32> to vector<2x32xf32>
    %c0_85 = arith.constant 0 : index
    %c160 = arith.constant 160 : index
    %161 = vector.load %arg7[%c0_85, %c160] : memref<8x256xf32, #tpu.memory_space<vmem>>, vector<2x32xf32>
    tpu.vector_store %arg7[%c0_85, %c160], %160 {strides = array<i32>} : memref<8x256xf32, #tpu.memory_space<vmem>>, vector<2x32xf32>,
    %162 = vector.extract_strided_slice %141 {offsets = [8, 0], sizes = [2, 32], strides = [1, 1]} : vector<32x32xf32> to vector<2x32xf32>
    %c0_86 = arith.constant 0 : index
    %c192 = arith.constant 192 : index
    %163 = vector.load %arg7[%c0_86, %c192] : memref<8x256xf32, #tpu.memory_space<vmem>>, vector<2x32xf32>
    tpu.vector_store %arg7[%c0_86, %c192], %162 {strides = array<i32>} : memref<8x256xf32, #tpu.memory_space<vmem>>, vector<2x32xf32>,
    %164 = vector.extract_strided_slice %141 {offsets = [10, 0], sizes = [2, 32], strides = [1, 1]} : vector<32x32xf32> to vector<2x32xf32>
    %c0_87 = arith.constant 0 : index
    %c224 = arith.constant 224 : index
    %165 = vector.load %arg7[%c0_87, %c224] : memref<8x256xf32, #tpu.memory_space<vmem>>, vector<2x32xf32>
    tpu.vector_store %arg7[%c0_87, %c224], %164 {strides = array<i32>} : memref<8x256xf32, #tpu.memory_space<vmem>>, vector<2x32xf32>,
    tpu.wait_dma2 semaphore(%arg5 : memref<!tpu.dma_semaphore, #tpu.memory_space<semaphore_mem>>) src(%arg2 : memref<400x256xf32, #tpu.memory_space<any>>) dst(%arg4 : memref<400x256xf32, #tpu.memory_space<vmem>>)
    %c0_88 = arith.constant 0 : index
    %c0_89 = arith.constant 0 : index
    %166 = vector.load %arg7[%c0_88, %c0_89] : memref<8x256xf32, #tpu.memory_space<vmem>>, vector<2x256xf32>
    %c0_90 = arith.constant 0 : index
    %c0_91 = arith.constant 0 : index
    %167 = vector.load %arg4[%c0_90, %c0_91] : memref<400x256xf32, #tpu.memory_space<vmem>>, vector<256x256xf32>
    %cst_92 = arith.constant dense<0.000000e+00> : vector<2x256xf32>
    %168 = tpu.matmul %166, %167, %cst_92 {dimension_numbers = #tpu.dot_dimension_numbers<[1], [0], [0], [1], [0, 0, 1, 1], [], []>} : vector<2x256xf32>, vector<256x256xf32>, vector<2x256xf32> -> vector<2x256xf32>
    %c256 = arith.constant 256 : index
    %c0_93 = arith.constant 0 : index
    %169 = vector.load %arg4[%c256, %c0_93] : memref<400x256xf32, #tpu.memory_space<vmem>>, vector<1x256xf32>
    %170 = vector.broadcast %169 : vector<1x256xf32> to vector<2x256xf32>
    %171 = arith.addf %168, %170 : vector<2x256xf32>
    %cst_94 = arith.constant 0.000000e+00 : f32
    %172 = vector.broadcast %cst_94 : f32 to vector<2x256xf32>
    %173 = arith.maximumf %171, %172 : vector<2x256xf32>
    %174 = vector.extract_strided_slice %173 {offsets = [0, 0], sizes = [2, 128], strides = [1, 1]} : vector<2x256xf32> to vector<2x128xf32>
    %c264 = arith.constant 264 : index
    %c0_95 = arith.constant 0 : index
    %175 = vector.load %arg4[%c264, %c0_95] : memref<400x256xf32, #tpu.memory_space<vmem>>, vector<128x128xf32>
    %cst_96 = arith.constant dense<0.000000e+00> : vector<2x128xf32>
    %176 = tpu.matmul %174, %175, %cst_96 {dimension_numbers = #tpu.dot_dimension_numbers<[1], [0], [0], [1], [0, 0, 1, 1], [], []>} : vector<2x128xf32>, vector<128x128xf32>, vector<2x128xf32> -> vector<2x128xf32>
    %177 = vector.extract_strided_slice %173 {offsets = [0, 128], sizes = [2, 128], strides = [1, 1]} : vector<2x256xf32> to vector<2x128xf32>
    %c264_97 = arith.constant 264 : index
    %c128_98 = arith.constant 128 : index
    %178 = vector.load %arg4[%c264_97, %c128_98] : memref<400x256xf32, #tpu.memory_space<vmem>>, vector<128x128xf32>
    %cst_99 = arith.constant dense<0.000000e+00> : vector<2x128xf32>
    %179 = tpu.matmul %177, %178, %cst_99 {dimension_numbers = #tpu.dot_dimension_numbers<[1], [0], [0], [1], [0, 0, 1, 1], [], []>} : vector<2x128xf32>, vector<128x128xf32>, vector<2x128xf32> -> vector<2x128xf32>
    %180 = arith.addf %176, %179 : vector<2x128xf32>
    %c392 = arith.constant 392 : index
    %c0_100 = arith.constant 0 : index
    %181 = vector.load %arg4[%c392, %c0_100] : memref<400x256xf32, #tpu.memory_space<vmem>>, vector<1x128xf32>
    %182 = vector.broadcast %181 : vector<1x128xf32> to vector<2x128xf32>
    %183 = arith.addf %180, %182 : vector<2x128xf32>
    %cst_101 = arith.constant 0.000000e+00 : f32
    %184 = vector.broadcast %cst_101 : f32 to vector<2x128xf32>
    %185 = arith.maximumf %183, %184 : vector<2x128xf32>
    %c392_102 = arith.constant 392 : index
    %c128_103 = arith.constant 128 : index
    %186 = vector.load %arg4[%c392_102, %c128_103] : memref<400x256xf32, #tpu.memory_space<vmem>>, vector<1x128xf32>
    %187 = vector.broadcast %186 : vector<1x128xf32> to vector<2x128xf32>
    %188 = arith.mulf %185, %187 : vector<2x128xf32>
    %cst_104 = arith.constant dense<0.000000e+00> : vector<2xf32>
    %189 = vector.multi_reduction <add>, %188, %cst_104 [1] : vector<2x128xf32> to vector<2xf32>
    %190 = vector.shape_cast %189 : vector<2xf32> to vector<2x1xf32>
    %c393 = arith.constant 393 : index
    %c0_105 = arith.constant 0 : index
    %191 = vector.load %arg4[%c393, %c0_105] : memref<400x256xf32, #tpu.memory_space<vmem>>, vector<1x1xf32>
    %192 = vector.broadcast %191 : vector<1x1xf32> to vector<2x1xf32>
    %193 = arith.addf %190, %192 : vector<2x1xf32>
    %cst_106 = arith.constant 0.000000e+00 : f32
    %194 = vector.broadcast %cst_106 : f32 to vector<2x1xf32>
    %195 = arith.maximumf %193, %194 : vector<2x1xf32>
    %196 = vector.shape_cast %195 : vector<2x1xf32> to vector<2x1xf32>
    %197 = vector.broadcast %196 : vector<2x1xf32> to vector<2x128xf32>
    %c0_107 = arith.constant 0 : index
    %c0_108 = arith.constant 0 : index
    %198 = vector.load %arg3[%c0_107, %c0_108] : memref<2x128xf32, #tpu.memory_space<vmem>>, vector<2x128xf32>
    tpu.vector_store %arg3[%c0_107, %c0_108], %197 {strides = array<i32>} : memref<2x128xf32, #tpu.memory_space<vmem>>, vector<2x128xf32>,
    return
  }
}

</mosaic_0001>

<bundles_post_ra>
// kernel: critic_forward.1
= control target key start
LH: loop header
LB: loop body
LE: loop exit
PB: predicated region body
PF: predicated region fallthrough
CT: control target
= control target key end

     0   :  { %vm87_vm0 = vcmask 130048   ;;  %s1270_s28 = smov 32   ;;  %s1271_s29 = smov 64   ;;  %vm74_vm1 = vcmask 261120   ;;  %v1273_v9 = vmov 0.0   ;;  %s1593_s1 = inlined_call_operand.vmem [shape: f32[136,128], index: 1, kind: input, shape index: {}]   ;;  %s1594_s0 = inlined_call_operand.vmem [shape: f32[40,16], index: 0, kind: input, shape index: {}]   ;;  %s1595_s2 = inlined_call_operand.hbm [shape: f32[400,256], index: 2, kind: input, shape index: {}]   ;;  %s1596_s3 = inlined_call_operand.vmem [shape: f32[2,128], index: 3, kind: output, shape index: {}]  }
   0x1   :  { %v86_v0 = vld [vmem:[%s1593_s1 + $0x38] sm:$0xff]  ;;  %v85_v1 = vld [vmem:[%s1593_s1 + $0x30] sm:$0xff]  ;;  %v81_v4 = vld [vmem:[%s1594_s0] sm:$0xff]  ;;  %s1272_s30 = smov 96   ;;  %76 = vst.msk [vmem:[#allocation4 + $0x8] sm:$0xff] %vm74_vm1, %v1273_v9  ;;  %s19_s21 = sshll.u32 %s1595_s2, 4  ;;  %s20_s21 = int_to_ptr.hbm [resolvable:$true] %s19_s21 }
   0x2   :  { %v83_v2 = vld [vmem:[%s1594_s0 + $0x10] sm:$0xff]  ;;  %1173 = vmatpush.msra.mxu2 %v86_v0  ;;  %1174 = vmatpush.msra.mxu3 %v86_v0  ;;  %v84_v3 = vld [vmem:[%s1594_s0 + $0x18] sm:$0xff]  ;;  %v82_v5 = vld [vmem:[%s1594_s0 + $0x8] sm:$0xff]  ;;  %77 = vst.msk [vmem:[#allocation4 + $0x10] sm:$0xff] %vm74_vm1, %v1273_v9  ;;  %s1274_s22 = smov [#allocation2]  }
   0x3   :  { %114 = vmatpush.msra.mxu0 %v86_v0  ;;  %1172 = vmatpush.msra.mxu1 %v86_v0  ;;  %v209_v6 = vld [vmem:[%s1593_s1] sm:$0xff]  ;;  %v210_v7 = vld [vmem:[%s1593_s1 + $0x8] sm:$0xff]  ;;  %78 = vst.msk [vmem:[#allocation4 + $0x18] sm:$0xff] %vm74_vm1, %v1273_v9  ;;  %s21_s23 = sshll.u32 %s1274_s22, 4  ;;  %s22_s23 = int_to_ptr.vmem [resolvable:$true] %s21_s23 }
   0x4   :  { %1176 = vmatpush.msra.mxu2 %v85_v1  ;;  %1177 = vmatpush.msra.mxu3 %v85_v1  ;;  %v1184_v8 = vpack.i.bf16 %v209_v6, %v210_v7  ;;  %75 = vst.msk [vmem:[#allocation4] sm:$0xff] %vm74_vm1, %v1273_v9  ;;  %24 = dma.hbm_to_vmem [thread:$0]  %s20_s21, 12800, %s22_s23, [#allocation3] }
   0x5   :  { %1134 = vmatmul.msk.f32.vlgmr.msra.gmra.mxu2 %vm87_vm0, %v83_v2  ;;  %1135 = vmatmul.msk.f32.vlgmr.msra.gmra.mxu3 %vm87_vm0, %v84_v3  ;;  %79 = vst.msk [vmem:[#allocation4 + $0x20] sm:$0xff] %vm74_vm1, %v1273_v9 }
   0x6   :  { %115 = vmatpush.msra.mxu0 %v85_v1  ;;  %1175 = vmatpush.msra.mxu1 %v85_v1  ;;  %80 = vst.msk [vmem:[#allocation4 + $0x28] sm:$0xff] %vm74_vm1, %v1273_v9 }
   0x7   :  { %1132 = vmatmul.msk.f32.vlgmr.msra.gmra.mxu0 %vm87_vm0, %v81_v4  ;;  %1133 = vmatmul.msk.f32.vlgmr.msra.gmra.mxu1 %vm87_vm0, %v82_v5 }
   0x8   :  { %1185 = vrot.lane.b32.xlu0 %v1184_v8, %s1270_s28  ;;  %1195 = vrot.lane.b32.xlu1 %v1184_v8, %s1271_s29 }
   0x9   :  { %345 = vmatpush.msrb.mxu3 %v210_v7 }
   0xb   :  { %346 = vmatpush.msrb.mxu3 %v209_v6 }
  0x10   :  { %1190 = vrot.lane.b32.xlu0 %v1184_v8, %s1272_s30 }
  0x7a   :  { %v1186_v51 = vpop.permute.xlu0 %1185  ;;  %v1196_v58 = vpop.permute.xlu1 %1195 }
  0x7b   :  { %v1187_v55 = vunpack.i.l.bf16 %v1186_v51  ;;  %v1188_v57 = vunpack.i.h.bf16 %v1186_v51  ;;  %v1197_v61 = vunpack.i.l.bf16 %v1196_v58  ;;  %v1198_v62 = vunpack.i.h.bf16 %v1196_v58 }
  0x7d   :  { %304 = vmatpush.msrb.mxu2 %v1187_v55  ;;  %392 = vmatpush.msrb.mxu0 %v1197_v61 }
  0x7f   :  { %305 = vmatpush.msrb.mxu2 %v1188_v57  ;;  %393 = vmatpush.msrb.mxu0 %v1198_v62 }
  0x82   :  { %v1191_v60 = vpop.permute.xlu0 %1190 }
  0x83   :  { %v1192_v63 = vunpack.i.l.bf16 %v1191_v60  ;;  %v1193_v0 = vunpack.i.h.bf16 %v1191_v60 }
  0x84   :  { %v1339_v10 = vpop.f32.mrf.mxu0  ;;  %v1341_v11 = vpop.f32.mrf.mxu1 }
  0x85   :  { %v131_v12 = vmul.f32 0.03125, %v1339_v10  ;;  %v148_v13 = vmul.f32 %v1339_v10, %v1339_v10  ;;  %v132_v14 = vmul.f32 0.03125, %v1341_v11  ;;  %v149_v15 = vmul.f32 %v1341_v11, %v1341_v11  ;;  %249 = vmatpush.msrb.mxu1 %v1192_v63 }
  0x87   :  { %v135_v16 = vsel %vm87_vm0, %v131_v12, 0.0  ;;  %v152_v17 = vmul.f32 0.03125, %v148_v13  ;;  %v136_v18 = vsel %vm87_vm0, %v132_v14, 0.0  ;;  %v153_v19 = vmul.f32 0.03125, %v149_v15  ;;  %250 = vmatpush.msrb.mxu1 %v1193_v0  ;;  %v1229_v13 = vld [vmem:[%s1593_s1 + $0x80] ss:$0 sm:$0xff] }
  0x88   :  { %v137_v20 = vadd.f32 %v136_v18, %v135_v16  ;;  %v1351_v21 = vpop.f32.mrf.mxu2  ;;  %v1353_v22 = vpop.f32.mrf.mxu3 }
  0x89   :  { %v156_v23 = vsel %vm87_vm0, %v152_v17, 0.0  ;;  %v157_v24 = vsel %vm87_vm0, %v153_v19, 0.0  ;;  %v133_v25 = vmul.f32 0.03125, %v1351_v21  ;;  %v150_v26 = vmul.f32 %v1351_v21, %v1351_v21  ;;  %v1230_v19 = vld [vmem:[%s1593_s1 + $0x81] ss:$0 sm:$0xff] }
  0x8a   :  { %v158_v27 = vadd.f32 %v157_v24, %v156_v23  ;;  %v134_v28 = vmul.f32 0.03125, %v1353_v22  ;;  %v151_v29 = vmul.f32 %v1353_v22, %v1353_v22 }
  0x8b   :  { %v138_v30 = vsel %vm87_vm0, %v133_v25, 0.0  ;;  %v154_v31 = vmul.f32 0.03125, %v150_v26 }
  0x8c   :  { %v139_v32 = vadd.f32 %v138_v30, %v137_v20  ;;  %v140_v33 = vsel %vm87_vm0, %v134_v28, 0.0  ;;  %v155_v34 = vmul.f32 0.03125, %v151_v29 }
  0x8d   :  { %v159_v35 = vsel %vm87_vm0, %v154_v31, 0.0  ;;  %v493_v31 = vld [vmem:[%s1593_s1 + $0x20] sm:$0xff] }
  0x8e   :  { %v160_v36 = vadd.f32 %v159_v35, %v158_v27  ;;  %v141_v37 = vadd.f32 %v140_v33, %v139_v32  ;;  %v161_v38 = vsel %vm87_vm0, %v155_v34, 0.0  ;;  %v494_v32 = vld [vmem:[%s1593_s1 + $0x28] sm:$0xff]  ;;  %v491_v34 = vld [vmem:[%s1593_s1 + $0x10] sm:$0xff]  ;;  %v492_v35 = vld [vmem:[%s1593_s1 + $0x18] sm:$0xff] }
  0x8f   :  { %v1199_v33 = vpack.i.bf16 %v493_v31, %v494_v32  ;;  %641 = vmatpush.msra.mxu3 %v494_v32 }
  0x90   :  { %v142_v39 = vrot.slane %v141_v37, 4  ;;  %v162_v40 = vadd.f32 %v161_v38, %v160_v36  ;;  %v1204_v36 = vpack.i.bf16 %v491_v34, %v492_v35 }
  0x91   :  { %1200 = vrot.lane.b32.xlu1 %v1199_v33, %s1272_s30  ;;  %1210 = vrot.lane.b32.xlu0 %v1199_v33, %s1270_s28 }
  0x92   :  { %v143_v41 = vadd.f32 %v142_v39, %v141_v37  ;;  %v163_v42 = vrot.slane %v162_v40, 4  ;;  %1205 = vrot.lane.b32.xlu2 %v1204_v36, %s1272_s30  ;;  %642 = vmatpush.msra.mxu3 %v493_v31 }
  0x94   :  { %v144_v43 = vrot.slane %v143_v41, 2  ;;  %v164_v44 = vadd.f32 %v163_v42, %v162_v40  ;;  %643 = vmatpush.msra.mxu3 %v492_v35  ;;  %v782_v40 = vld [vmem:[%s1593_s1 + $0x30] sm:$0xf] }
  0x96   :  { %v145_v45 = vadd.f32 %v144_v43, %v143_v41  ;;  %v165_v46 = vrot.slane %v164_v44, 2  ;;  %644 = vmatpush.msra.mxu3 %v491_v34 }
  0x98   :  { %v146_v47 = vrot.slane %v145_v45, 1  ;;  %v166_v48 = vadd.f32 %v165_v46, %v164_v44  ;;  %v1418_v46 = vld [vmem:[#allocation4 + $0x22] sm:$0xff] }
  0x99   :  { %1215 = vrot.lane.b32.xlu1 %v1204_v36, %s1270_s28  ;;  %1225 = vrot.lane.b32.xlu0 %v1204_v36, %s1271_s29 }
  0x9a   :  { %v147_v49 = vadd.f32 %v146_v47, %v145_v45  ;;  %v167_v50 = vrot.slane %v166_v48, 1  ;;  %786 = vrot.lane.b32.xlu2 %v782_v40, %s1271_s29  ;;  %v1416_v45 = vld [vmem:[#allocation4 + $0x20] sm:$0xff] }
  0x9c   :  { %v168_v52 = vadd.f32 %v167_v50, %v166_v48  ;;  %v169_v53 = vmul.f32 %v147_v49, %v147_v49  ;;  %v173_v7 = vsub.f32 %v1341_v11, %v147_v49  ;;  %v174_v8 = vsub.f32 %v1351_v21, %v147_v49 }
  0x9d   :  { %v175_v12 = vsub.f32 %v1353_v22, %v147_v49  ;;  %v172_v14 = vsub.f32 %v1339_v10, %v147_v49  ;;  %v25_v49 = vlaneseq }
  0x9e   :  { %v170_v54 = vsub.f32 %v168_v52, %v169_v53 }
  0x9f   :  { %v26_v51 = vshrl.u32 %v25_v49, 7 }
  0xa0   :  { %v171_v56 = vmax.f32 %v170_v54, 0.0 }
  0xa1   :  { %v27_v53 = vadd.s32 8, %v26_v51  ;;  %v28_v54 = vadd.s32 16, %v26_v51  ;;  %v29_v0 = vadd.s32 24, %v26_v51 }
  0xa2   :  { %v176_v59 = vadd.f32 1e-05, %v171_v56  ;;  %1220 = vrot.lane.b32.xlu2 %v1199_v33, %s1271_s29 }
  0xa3   :  { %v31_v58 = vshra.s32 %v27_v53, 1  ;;  %v32_v60 = vshra.s32 %v28_v54, 1 }
  0xa4   :  { %1237 = vrsqrt.f32 %v176_v59  ;;  %vm183_vm3 = vweird.f32 %v176_v59 }
  0xa5   :  { %v1425_v61 = vshra.s32 %v31_v58, 2  ;;  %v1427_v62 = vand.u32 3, %v31_v58 }
  0xa7   :  { %vm43_vm5 = vcmp.lt.s32.totalorder %v1425_v61, 3  ;;  %vm47_vm6 = vcmp.lt.s32.totalorder %v1427_v62, 3 }
  0xa8   :  { %vm51_vm11 = vmand %vm43_vm5, %vm47_vm6  ;;  %vm788_vm6 = vcmask 31744  }
  0xaa   :  { %v1238_v1 = vpop.eup %1237 }
  0xab   :  { %v178_v2 = vmul.f32 %v1238_v1, %v176_v59  ;;  %vm184_vm2 = vweird.f32 %v1238_v1  ;;  %v30_v59 = vshra.s32 %v26_v51, 1 }
  0xac   :  { %vm185_vm4 = vmor %vm183_vm3, %vm184_vm2  ;;  %vm792_vm2 = vcmask 1043456  }
  0xad   :  { %v179_v3 = vmul.f32 %v1238_v1, %v178_v2  ;;  %v1431_v2 = vand.u32 3, %v30_v59 }
  0xaf   :  { %v180_v4 = vmul.f32 0.5, %v179_v3  ;;  %v1433_v3 = vshra.s32 %v32_v60, 2  ;;  %vm46_vm8 = vcmp.lt.s32.totalorder %v1431_v2, 3 }
  0xb1   :  { %v181_v5 = vsub.f32 1.5, %v180_v4  ;;  %v1435_v4 = vand.u32 3, %v32_v60  ;;  %vm44_vm9 = vcmp.lt.s32.totalorder %v1433_v3, 3 }
  0xb3   :  { %v182_v6 = vmul.f32 %v1238_v1, %v181_v5  ;;  %vm48_vm10 = vcmp.lt.s32.totalorder %v1435_v4, 3 }
  0xb4   :  { %vm52_vm13 = vmand %vm44_vm9, %vm48_vm10  ;;  %vm62_vm10 = vcmp.lt.s32.totalorder %v1431_v2, 2  ;;  %v822_v2 = vld [vmem:[%s1593_s1 + $0x70] sm:$0xff] }
  0xb5   :  { %v186_v15 = vsel %vm185_vm4, %v1238_v1, %v182_v6  ;;  %v1429_v1 = vshra.s32 %v30_v59, 2 }
  0xb6   :  { %v188_v16 = vmul.f32 %v186_v15, %v173_v7  ;;  %v189_v17 = vmul.f32 %v186_v15, %v174_v8  ;;  %v190_v18 = vmul.f32 %v186_v15, %v175_v12  ;;  %v187_v11 = vmul.f32 %v186_v15, %v172_v14 }
  0xb7   :  { %v33_v8 = vshra.s32 %v29_v0, 1  ;;  %vm42_vm7 = vcmp.lt.s32.totalorder %v1429_v1, 3  ;;  %vm58_vm9 = vcmp.lt.s32.totalorder %v1429_v1, 2  ;;  %v823_v1 = vld [vmem:[%s1593_s1 + $0x78] sm:$0xff] }
  0xb8   :  { %v193_v20 = vmul.f32 %v1229_v13, %v188_v16  ;;  %v194_v21 = vmul.f32 %v1229_v13, %v189_v17  ;;  %v195_v23 = vmul.f32 %v1229_v13, %v190_v18  ;;  %v192_v22 = vmul.f32 %v1229_v13, %v187_v11  ;;  %vm50_vm12 = vmand %vm42_vm7, %vm46_vm8 }
  0xb9   :  { %v1449_v11 = vand.u32 3, %v33_v8  ;;  %vm59_vm7 = vcmp.lt.s32.totalorder %v1425_v61, 2  ;;  %vm63_vm8 = vcmp.lt.s32.totalorder %v1427_v62, 2 }
  0xba   :  { %v198_v24 = vadd.f32 %v1230_v19, %v193_v20  ;;  %v199_v25 = vadd.f32 %v1230_v19, %v194_v21  ;;  %v200_v26 = vadd.f32 %v1230_v19, %v195_v23  ;;  %v197_v27 = vadd.f32 %v1230_v19, %v192_v22 }
  0xbb   :  { %v1447_v19 = vshra.s32 %v33_v8, 2  ;;  %v55_v23 = vsel %vm51_vm11, 0.055555556, %v1273_v9  ;;  %v54_v22 = vsel %vm50_vm12, 0.055555556, %v1273_v9  ;;  %vm49_vm15 = vcmp.lt.s32.totalorder %v1449_v11, 3 }
  0xbc   :  { %v202_v28 = vmax.f32 %v198_v24, 0.0  ;;  %v203_v29 = vmax.f32 %v199_v25, 0.0  ;;  %v204_v10 = vmax.f32 %v200_v26, 0.0  ;;  %v201_v30 = vmax.f32 %v197_v27, 0.0 }
  0xbd   :  { %v56_v27 = vsel %vm52_vm13, 0.055555556, %v1273_v9  ;;  %vm45_vm14 = vcmp.lt.s32.totalorder %v1447_v19, 3  ;;  %vm60_vm11 = vcmp.lt.s32.totalorder %v1433_v3, 2  ;;  %vm64_vm12 = vcmp.lt.s32.totalorder %v1435_v4, 2  ;;  %vm67_vm13 = vmand %vm59_vm7, %vm63_vm8 }
  0xbe   :  { %206 = vst.msk [vmem:[#allocation4 + $0x8] sm:$0xff] %vm87_vm0, %v202_v28  ;;  %1144 = vmatmul.msk.f32.vlgmr.msrb.gmra.mxu3 %vm87_vm0, %v201_v30  ;;  %v71_v4 = vsel %vm67_vm13, 0.125, %v1273_v9  ;;  %vm852_vm7 = vcmask 254976   ;;  %vm859_vm8 = vcmask 517376  }
  0xbf   :  { %207 = vst.msk [vmem:[#allocation4 + $0x10] sm:$0xff] %vm87_vm0, %v203_v29 }
  0xc0   :  { %208 = vst.msk [vmem:[#allocation4 + $0x18] sm:$0xff] %vm87_vm0, %v204_v10 }
  0xc1   :  { %205 = vst.msk [vmem:[#allocation4] sm:$0xff] %vm87_vm0, %v201_v30 }
  0xc5   :  { %v264_v37 = vld [vmem:[#allocation4 + $0x8] sm:$0xff] }
  0xc6   :  { %v268_v38 = vld [vmem:[#allocation4 + $0xa] sm:$0xff]  ;;  %1145 = vmatmul.msk.f32.gmra.mxu3 %vm87_vm0, %v202_v28  ;;  %1148 = vmatmul.msk.f32.vlgmr.msrb.gmra.mxu0 %vm87_vm0, %v264_v37 }
  0xc7   :  { %1140 = vmatmul.msk.f32.vlgmr.msrb.gmra.mxu2 %vm87_vm0, %v268_v38  ;;  %v265_v41 = vld [vmem:[#allocation4 + $0x10] sm:$0xff]  ;;  %v266_v43 = vld [vmem:[#allocation4 + $0x18] sm:$0xff] }
  0xc8   :  { %v211_v39 = vld [vmem:[#allocation4 + $0x2] sm:$0xff]  ;;  %v269_v42 = vld [vmem:[#allocation4 + $0x12] sm:$0xff]  ;;  %v270_v44 = vld [vmem:[#allocation4 + $0x1a] sm:$0xff] }
  0xc9   :  { %1136 = vmatmul.msk.f32.vlgmr.msrb.gmra.mxu1 %vm87_vm0, %v211_v39 }
  0xce   :  { %1146 = vmatmul.msk.f32.gmra.mxu3 %vm87_vm0, %v203_v29  ;;  %1149 = vmatmul.msk.f32.gmra.mxu0 %vm87_vm0, %v265_v41 }
  0xcf   :  { %1141 = vmatmul.msk.f32.gmra.mxu2 %vm87_vm0, %v269_v42 }
  0xd1   :  { %1137 = vmatmul.msk.f32.gmra.mxu1 %vm87_vm0, %v268_v38 }
  0xd6   :  { %1147 = vmatmul.msk.f32.gmra.mxu3 %vm87_vm0, %v204_v10  ;;  %1150 = vmatmul.msk.f32.gmra.mxu0 %vm87_vm0, %v266_v43 }
  0xd7   :  { %1142 = vmatmul.msk.f32.gmra.mxu2 %vm87_vm0, %v270_v44 }
  0xd9   :  { %1138 = vmatmul.msk.f32.gmra.mxu1 %vm87_vm0, %v269_v42 }
  0xde   :  { %1151 = vmatmul.msk.f32.gmra.mxu0 %vm87_vm0, %v1416_v45 }
  0xdf   :  { %1143 = vmatmul.msk.f32.gmra.mxu2 %vm87_vm0, %v1418_v46 }
  0xe1   :  { %1139 = vmatmul.msk.f32.gmra.mxu1 %vm87_vm0, %v270_v44  ;;  %vm53_vm0 = vmand %vm45_vm14, %vm49_vm15 }
  0xe2   :  { %v57_v41 = vsel %vm53_vm0, 0.055555556, %v1273_v9  ;;  %vm66_vm14 = vmand %vm58_vm9, %vm62_vm10  ;;  %vm61_vm0 = vcmp.lt.s32.totalorder %v1447_v19, 2  ;;  %vm865_vm9 = vcmask 779776   ;;  %vm871_vm10 = vcmask 1042176  }
  0xe3   :  { %vm68_vm15 = vmand %vm60_vm11, %vm64_vm12 }
  0xec   :  { %v1206_v60 = vpop.permute.xlu2 %1205 }
 0x103   :  { %v1201_v59 = vpop.permute.xlu1 %1200 }
 0x104   :  { %v1202_v0 = vunpack.i.l.bf16 %v1201_v59 }
 0x106   :  { %539 = vmatpush.msra.mxu1 %v1202_v0  ;;  %v1232_v0 = vld [vmem:[%s1593_s1 + $0x83] ss:$0 sm:$0xff] }
 0x141   :  { %v348_v47 = vpop.f32.mrf.mxu3 }
 0x143   :  { %v395_v48 = vpop.f32.mrf.mxu0 }
 0x146   :  { %v252_v50 = vpop.f32.mrf.mxu1 }
 0x147   :  { %v349_v13 = vadd.f32 %v348_v47, %v252_v50 }
 0x149   :  { %v351_v55 = vpop.f32.mrf.mxu3 }
 0x14a   :  { %v307_v52 = vpop.f32.mrf.mxu2 }
 0x14b   :  { %v398_v57 = vpop.f32.mrf.mxu0  ;;  %v396_v6 = vadd.f32 %v395_v48, %v307_v52 }
 0x14d   :  { %v1445_v17 = vadd.f32 %v396_v6, %v349_v13  ;;  %v1207_v13 = vunpack.i.l.bf16 %v1206_v60 }
 0x14e   :  { %v255_v56 = vpop.f32.mrf.mxu1 }
 0x14f   :  { %v352_v12 = vadd.f32 %v351_v55, %v255_v56  ;;  %v430_v26 = vmul.f32 %v1445_v17, %v1445_v17  ;;  %v413_v31 = vmul.f32 %v1445_v17, %v54_v22 }
 0x151   :  { %v354_v14 = vpop.f32.mrf.mxu3  ;;  %v434_v34 = vmul.f32 %v430_v26, %v54_v22  ;;  %v417_v42 = vsel %vm74_vm1, %v413_v31, 0.0 }
 0x152   :  { %v310_v63 = vpop.f32.mrf.mxu2 }
 0x153   :  { %v399_v5 = vadd.f32 %v398_v57, %v310_v63  ;;  %v401_v15 = vpop.f32.mrf.mxu0  ;;  %v438_v49 = vsel %vm74_vm1, %v434_v34, 0.0 }
 0x155   :  { %v1443_v16 = vadd.f32 %v399_v5, %v352_v12 }
 0x156   :  { %v258_v7 = vpop.f32.mrf.mxu1 }
 0x157   :  { %v355_v20 = vadd.f32 %v354_v14, %v258_v7  ;;  %v431_v24 = vmul.f32 %v1443_v16, %v1443_v16  ;;  %v414_v28 = vmul.f32 %v1443_v16, %v55_v23  ;;  %v1203_v7 = vunpack.i.h.bf16 %v1201_v59 }
 0x159   :  { %v435_v32 = vmul.f32 %v431_v24, %v55_v23  ;;  %v357_v35 = vpop.f32.mrf.mxu3  ;;  %v418_v37 = vsel %vm74_vm1, %v414_v28, 0.0  ;;  %540 = vmatpush.msra.mxu1 %v1203_v7  ;;  %v787_v23 = vpop.permute.xlu2 %786 }
 0x15a   :  { %v313_v18 = vpop.f32.mrf.mxu2  ;;  %v419_v48 = vadd.f32 %v418_v37, %v417_v42  ;;  %v1211_v28 = vpop.permute.xlu0 %1210 }
 0x15b   :  { %v402_v21 = vadd.f32 %v401_v15, %v313_v18  ;;  %v404_v30 = vpop.f32.mrf.mxu0  ;;  %v439_v43 = vsel %vm74_vm1, %v435_v32, 0.0  ;;  %v1208_v18 = vunpack.i.h.bf16 %v1206_v60  ;;  %541 = vmatpush.msra.mxu1 %v1207_v13  ;;  %v1216_v37 = vpop.permute.xlu1 %1215 }
 0x15c   :  { %v440_v53 = vadd.f32 %v439_v43, %v438_v49 }
 0x15d   :  { %v1455_v25 = vadd.f32 %v402_v21, %v355_v20  ;;  %542 = vmatpush.msra.mxu1 %v1208_v18 }
 0x15e   :  { %v261_v10 = vpop.f32.mrf.mxu1 }
 0x15f   :  { %v432_v29 = vmul.f32 %v1455_v25, %v1455_v25  ;;  %v415_v33 = vmul.f32 %v1455_v25, %v56_v27  ;;  %v358_v39 = vadd.f32 %v357_v35, %v261_v10  ;;  %1168 = vmatpush.msk.msrb.mxu1 %vm792_vm2, %v787_v23  ;;  %vm65_vm2 = vcmp.lt.s32.totalorder %v1449_v11, 2 }
 0x161   :  { %v436_v38 = vmul.f32 %v432_v29, %v56_v27  ;;  %v420_v44 = vsel %vm74_vm1, %v415_v33, 0.0  ;;  %v1221_v32 = vpop.permute.xlu2 %1220  ;;  %v1213_v33 = vunpack.i.h.bf16 %v1211_v28 }
 0x162   :  { %v316_v36 = vpop.f32.mrf.mxu2  ;;  %v421_v54 = vadd.f32 %v420_v44, %v419_v48  ;;  %v1222_v34 = vunpack.i.l.bf16 %v1221_v32 }
 0x163   :  { %v405_v40 = vadd.f32 %v404_v30, %v316_v36  ;;  %v441_v50 = vsel %vm74_vm1, %v436_v38, 0.0  ;;  %v1212_v30 = vunpack.i.l.bf16 %v1211_v28  ;;  %v1223_v36 = vunpack.i.h.bf16 %v1221_v32  ;;  %v781_v28 = vld [vmem:[%s1594_s0 + $0x20] sm:$0x3] }
 0x164   :  { %v442_v57 = vadd.f32 %v441_v50, %v440_v53  ;;  %694 = vmatpush.msra.mxu0 %v1222_v34  ;;  %v1218_v38 = vunpack.i.h.bf16 %v1216_v37 }
 0x165   :  { %v1472_v47 = vadd.f32 %v405_v40, %v358_v39  ;;  %600 = vmatpush.msra.mxu2 %v1212_v30  ;;  %v1217_v39 = vunpack.i.l.bf16 %v1216_v37 }
 0x166   :  { %695 = vmatpush.msra.mxu0 %v1223_v36 }
 0x167   :  { %v416_v51 = vmul.f32 %v1472_v47, %v57_v41  ;;  %v433_v52 = vmul.f32 %v1472_v47, %v1472_v47  ;;  %601 = vmatpush.msra.mxu2 %v1213_v33 }
 0x169   :  { %v422_v55 = vsel %vm74_vm1, %v416_v51, 0.0  ;;  %v437_v56 = vmul.f32 %v433_v52, %v57_v41  ;;  %v1226_v41 = vpop.permute.xlu0 %1225  ;;  %602 = vmatpush.msra.mxu2 %v1217_v39 }
 0x16a   :  { %v423_v58 = vadd.f32 %v422_v55, %v421_v54  ;;  %v1228_v42 = vunpack.i.h.bf16 %v1226_v41  ;;  %v1227_v43 = vunpack.i.l.bf16 %v1226_v41 }
 0x16b   :  { %v443_v63 = vsel %vm74_vm1, %v437_v56, 0.0  ;;  %603 = vmatpush.msra.mxu2 %v1218_v38  ;;  %v1231_v56 = vld [vmem:[%s1593_s1 + $0x82] ss:$0 sm:$0xff] }
 0x16c   :  { %v424_v5 = vrot.slane %v423_v58, 4  ;;  %v444_v6 = vadd.f32 %v443_v63, %v442_v57  ;;  %696 = vmatpush.msra.mxu0 %v1227_v43  ;;  %v821_v43 = vld [vmem:[%s1593_s1 + $0x68] sm:$0xff] }
 0x16d   :  { %838 = vmatpush.msrb.mxu2 %v823_v1 }
 0x16e   :  { %v425_v8 = vadd.f32 %v424_v5, %v423_v58  ;;  %v445_v12 = vrot.slane %v444_v6, 4  ;;  %697 = vmatpush.msra.mxu0 %v1228_v42 }
 0x16f   :  { %839 = vmatpush.msrb.mxu2 %v822_v2 }
 0x170   :  { %v426_v14 = vrot.slane %v425_v8, 2  ;;  %v446_v15 = vadd.f32 %v445_v12, %v444_v6 }
 0x171   :  { %840 = vmatpush.msrb.mxu2 %v821_v43 }
 0x172   :  { %v427_v20 = vadd.f32 %v426_v14, %v425_v8  ;;  %v447_v21 = vrot.slane %v446_v15, 2 }
 0x174   :  { %v428_v22 = vrot.slane %v427_v20, 1  ;;  %v448_v24 = vadd.f32 %v447_v21, %v446_v15 }
 0x176   :  { %v429_v26 = vadd.f32 %v428_v22, %v427_v20  ;;  %v449_v27 = vrot.slane %v448_v24, 1 }
 0x178   :  { %v450_v29 = vadd.f32 %v449_v27, %v448_v24  ;;  %v451_v10 = vmul.f32 %v429_v26, %v429_v26  ;;  %v455_v53 = vsub.f32 %v1443_v16, %v429_v26  ;;  %v456_v54 = vsub.f32 %v1455_v25, %v429_v26 }
 0x179   :  { %v457_v55 = vsub.f32 %v1472_v47, %v429_v26  ;;  %v454_v57 = vsub.f32 %v1445_v17, %v429_v26 }
 0x17a   :  { %v452_v31 = vsub.f32 %v450_v29, %v451_v10 }
 0x17c   :  { %v453_v35 = vmax.f32 %v452_v31, 0.0 }
 0x17e   :  { %v458_v40 = vadd.f32 1e-05, %v453_v35 }
 0x180   :  { %1239 = vrsqrt.f32 %v458_v40  ;;  %vm465_vm4 = vweird.f32 %v458_v40 }
 0x186   :  { %v1240_v44 = vpop.eup %1239 }
 0x187   :  { %v460_v48 = vmul.f32 %v1240_v44, %v458_v40  ;;  %vm466_vm3 = vweird.f32 %v1240_v44 }
 0x188   :  { %vm467_vm5 = vmor %vm465_vm4, %vm466_vm3  ;;  %vm826_vm4 = vcmask 523264  }
 0x189   :  { %v461_v49 = vmul.f32 %v1240_v44, %v460_v48  ;;  %vm69_vm3 = vmand %vm61_vm0, %vm65_vm2 }
 0x18b   :  { %v462_v50 = vmul.f32 0.5, %v461_v49 }
 0x18d   :  { %v463_v51 = vsub.f32 1.5, %v462_v50 }
 0x18f   :  { %v464_v52 = vmul.f32 %v1240_v44, %v463_v51  ;;  %v72_v51 = vsel %vm68_vm15, 0.125, %v1273_v9 }
 0x191   :  { %v468_v58 = vsel %vm467_vm5, %v1240_v44, %v464_v52  ;;  %v70_v44 = vsel %vm66_vm14, 0.125, %v1273_v9 }
 0x192   :  { %v470_v59 = vmul.f32 %v468_v58, %v455_v53  ;;  %v471_v60 = vmul.f32 %v468_v58, %v456_v54  ;;  %v472_v63 = vmul.f32 %v468_v58, %v457_v55  ;;  %v469_v16 = vmul.f32 %v468_v58, %v454_v57  ;;  %v820_v53 = vld [vmem:[%s1593_s1 + $0x60] sm:$0xff]  ;;  %v819_v57 = vld [vmem:[%s1593_s1 + $0x58] sm:$0xff] }
 0x193   :  { %841 = vmatpush.msrb.mxu2 %v820_v53 }
 0x194   :  { %v475_v5 = vmul.f32 %v1231_v56, %v470_v59  ;;  %v476_v25 = vmul.f32 %v1231_v56, %v471_v60  ;;  %v477_v6 = vmul.f32 %v1231_v56, %v472_v63  ;;  %v474_v47 = vmul.f32 %v1231_v56, %v469_v16 }
 0x195   :  { %842 = vmatpush.msrb.mxu2 %v819_v57 }
 0x196   :  { %v480_v7 = vadd.f32 %v1232_v0, %v475_v5  ;;  %v481_v8 = vadd.f32 %v1232_v0, %v476_v25  ;;  %v482_v12 = vadd.f32 %v1232_v0, %v477_v6  ;;  %v479_v13 = vadd.f32 %v1232_v0, %v474_v47  ;;  %v818_v0 = vld [vmem:[%s1593_s1 + $0x50] sm:$0xff]  ;;  %v1233_v47 = vld [vmem:[%s1593_s1 + $0x86] ss:$0 sm:$0xff] }
 0x197   :  { %843 = vmatpush.msrb.mxu2 %v818_v0 }
 0x198   :  { %v484_v14 = vmax.f32 %v480_v7, 0.0  ;;  %v485_v15 = vmax.f32 %v481_v8, 0.0  ;;  %v486_v17 = vmax.f32 %v482_v12, 0.0  ;;  %v483_v18 = vmax.f32 %v479_v13, 0.0  ;;  %v817_v8 = vld [vmem:[%s1593_s1 + $0x48] sm:$0xff] }
 0x199   :  { %v73_v7 = vsel %vm69_vm3, 0.125, %v1273_v9  ;;  %v816_v9 = vld [vmem:[%s1593_s1 + $0x40] sm:$0xff]  ;;  %844 = vmatpush.msrb.mxu2 %v817_v8 }
 0x19a   :  { %488 = vst.msk [vmem:[#allocation4 + $0x8] sm:$0xff] %vm74_vm1, %v484_v14  ;;  %1160 = vmatmul.msk.f32.vlgmr.msra.gmra.mxu3 %vm74_vm1, %v483_v18 }
 0x19b   :  { %489 = vst.msk [vmem:[#allocation4 + $0x10] sm:$0xff] %vm74_vm1, %v485_v15  ;;  %845 = vmatpush.msrb.mxu2 %v816_v9 }
 0x19c   :  { %490 = vst.msk [vmem:[#allocation4 + $0x18] sm:$0xff] %vm74_vm1, %v486_v17 }
 0x19d   :  { %487 = vst.msk [vmem:[#allocation4] sm:$0xff] %vm74_vm1, %v483_v18 }
 0x1a1   :  { %v556_v20 = vld [vmem:[#allocation4 + $0x8] sm:$0xff] }
 0x1a2   :  { %v560_v21 = vld [vmem:[#allocation4 + $0xa] sm:$0xff]  ;;  %1161 = vmatmul.msk.f32.gmra.mxu3 %vm74_vm1, %v484_v14  ;;  %1164 = vmatmul.msk.f32.vlgmr.msra.gmra.mxu0 %vm74_vm1, %v556_v20 }
 0x1a3   :  { %1156 = vmatmul.msk.f32.vlgmr.msra.gmra.mxu2 %vm74_vm1, %v560_v21  ;;  %v557_v22 = vld [vmem:[#allocation4 + $0x10] sm:$0xff]  ;;  %v558_v26 = vld [vmem:[#allocation4 + $0x18] sm:$0xff] }
 0x1a4   :  { %v495_v23 = vld [vmem:[#allocation4 + $0x2] sm:$0xff]  ;;  %v561_v24 = vld [vmem:[#allocation4 + $0x12] sm:$0xff]  ;;  %v562_v27 = vld [vmem:[#allocation4 + $0x1a] sm:$0xff] }
 0x1a5   :  { %1152 = vmatmul.msk.f32.vlgmr.msra.gmra.mxu1 %vm74_vm1, %v495_v23 }
 0x1aa   :  { %1162 = vmatmul.msk.f32.gmra.mxu3 %vm74_vm1, %v485_v15  ;;  %1165 = vmatmul.msk.f32.gmra.mxu0 %vm74_vm1, %v557_v22 }
 0x1ab   :  { %1157 = vmatmul.msk.f32.gmra.mxu2 %vm74_vm1, %v561_v24 }
 0x1ad   :  { %1153 = vmatmul.msk.f32.gmra.mxu1 %vm74_vm1, %v560_v21 }
 0x1b2   :  { %1163 = vmatmul.msk.f32.gmra.mxu3 %vm74_vm1, %v486_v17  ;;  %1166 = vmatmul.msk.f32.gmra.mxu0 %vm74_vm1, %v558_v26 }
 0x1b3   :  { %1158 = vmatmul.msk.f32.gmra.mxu2 %vm74_vm1, %v562_v27 }
 0x1b5   :  { %1154 = vmatmul.msk.f32.gmra.mxu1 %vm74_vm1, %v561_v24 }
 0x1ba   :  { %1167 = vmatmul.msk.f32.gmra.mxu0 %vm74_vm1, %v1416_v45 }
 0x1bb   :  { %1159 = vmatmul.msk.f32.gmra.mxu2 %vm74_vm1, %v1418_v46 }
 0x1bd   :  { %1155 = vmatmul.msk.f32.gmra.mxu1 %vm74_vm1, %v562_v27 }
 0x1c5   :  { %1169 = vmatmul.msk.f32.vlgmr.msrb.gmra.mxu1 %vm788_vm6, %v781_v28 }
 0x21d   :  { %v646_v29 = vpop.f32.mrf.mxu3 }
 0x21f   :  { %v699_v10 = vpop.f32.mrf.mxu0 }
 0x222   :  { %v544_v30 = vpop.f32.mrf.mxu1 }
 0x223   :  { %v647_v38 = vadd.f32 %v646_v29, %v544_v30 }
 0x225   :  { %v649_v32 = vpop.f32.mrf.mxu3 }
 0x226   :  { %v605_v31 = vpop.f32.mrf.mxu2 }
 0x227   :  { %v702_v34 = vpop.f32.mrf.mxu0  ;;  %v700_v36 = vadd.f32 %v699_v10, %v605_v31 }
 0x229   :  { %v1524_v61 = vadd.f32 %v700_v36, %v647_v38 }
 0x22a   :  { %v547_v33 = vpop.f32.mrf.mxu1 }
 0x22b   :  { %v650_v37 = vadd.f32 %v649_v32, %v547_v33  ;;  %v734_v50 = vmul.f32 %v1524_v61, %v1524_v61  ;;  %v717_v58 = vmul.f32 %v1524_v61, %v70_v44 }
 0x22d   :  { %v652_v39 = vpop.f32.mrf.mxu3  ;;  %v738_v19 = vmul.f32 %v734_v50, %v70_v44  ;;  %v721_v12 = vsel %vm74_vm1, %v717_v58, 0.0  ;;  %v1235_v58 = vld [vmem:[%s1593_s1 + $0x85] ss:$0 sm:$0xff] }
 0x22e   :  { %v608_v35 = vpop.f32.mrf.mxu2 }
 0x22f   :  { %v703_v45 = vadd.f32 %v702_v34, %v608_v35  ;;  %v705_v40 = vpop.f32.mrf.mxu0  ;;  %v742_v17 = vsel %vm74_vm1, %v738_v19, 0.0 }
 0x231   :  { %v1522_v41 = vadd.f32 %v703_v45, %v650_v37 }
 0x232   :  { %v550_v46 = vpop.f32.mrf.mxu1 }
 0x233   :  { %v653_v42 = vadd.f32 %v652_v39, %v550_v46  ;;  %v735_v48 = vmul.f32 %v1522_v41, %v1522_v41  ;;  %v718_v54 = vmul.f32 %v1522_v41, %v71_v4 }
 0x235   :  { %v739_v59 = vmul.f32 %v735_v48, %v71_v4  ;;  %v655_v11 = vpop.f32.mrf.mxu3  ;;  %v722_v16 = vsel %vm74_vm1, %v718_v54, 0.0  ;;  %v1234_v54 = vld [vmem:[%s1593_s1 + $0x84] ss:$0 sm:$0xff] }
 0x236   :  { %v611_v62 = vpop.f32.mrf.mxu2  ;;  %v723_v18 = vadd.f32 %v722_v16, %v721_v12 }
 0x237   :  { %v706_v3 = vadd.f32 %v705_v40, %v611_v62  ;;  %v708_v56 = vpop.f32.mrf.mxu0  ;;  %v743_v13 = vsel %vm74_vm1, %v739_v59, 0.0 }
 0x238   :  { %v744_v27 = vadd.f32 %v743_v13, %v742_v17 }
 0x239   :  { %v713_v49 = vadd.f32 %v706_v3, %v653_v42 }
 0x23a   :  { %v553_v52 = vpop.f32.mrf.mxu1 }
 0x23b   :  { %v736_v55 = vmul.f32 %v713_v49, %v713_v49  ;;  %v719_v60 = vmul.f32 %v713_v49, %v72_v51  ;;  %v656_v25 = vadd.f32 %v655_v11, %v553_v52 }
 0x23d   :  { %v740_v5 = vmul.f32 %v736_v55, %v72_v51  ;;  %v724_v14 = vsel %vm74_vm1, %v719_v60, 0.0 }
 0x23e   :  { %v614_v63 = vpop.f32.mrf.mxu2  ;;  %v725_v26 = vadd.f32 %v724_v14, %v723_v18 }
 0x23f   :  { %v709_v6 = vadd.f32 %v708_v56, %v614_v63  ;;  %v745_v21 = vsel %vm74_vm1, %v740_v5, 0.0  ;;  %v1236_v5 = vld [vmem:[%s1593_s1 + $0x87] ss:$0 sm:$0xff] }
 0x240   :  { %v746_v30 = vadd.f32 %v745_v21, %v744_v27 }
 0x241   :  { %v714_v15 = vadd.f32 %v709_v6, %v656_v25 }
 0x242   :  { %v812_v20 = vpop.f32.mrf.mxu1 }
 0x243   :  { %v720_v23 = vmul.f32 %v714_v15, %v73_v7  ;;  %v737_v22 = vmul.f32 %v714_v15, %v714_v15  ;;  %v813_v24 = vadd.f32 %v1233_v47, %v812_v20 }
 0x245   :  { %v726_v28 = vsel %vm74_vm1, %v720_v23, 0.0  ;;  %v741_v29 = vmul.f32 %v737_v22, %v73_v7  ;;  %v815_v10 = vmax.f32 %v813_v24, 0.0 }
 0x246   :  { %v727_v31 = vadd.f32 %v726_v28, %v725_v26 }
 0x247   :  { %v747_v32 = vsel %vm74_vm1, %v741_v29, 0.0  ;;  %1170 = vmatmul.msk.f32.vlgmr.msrb.gmra.mxu2 %vm826_vm4, %v815_v10 }
 0x248   :  { %v728_v33 = vrot.slane %v727_v31, 4  ;;  %v748_v34 = vadd.f32 %v747_v32, %v746_v30 }
 0x24a   :  { %v729_v35 = vadd.f32 %v728_v33, %v727_v31  ;;  %v749_v45 = vrot.slane %v748_v34, 4 }
 0x24c   :  { %v730_v36 = vrot.slane %v729_v35, 2  ;;  %v750_v46 = vadd.f32 %v749_v45, %v748_v34 }
 0x24e   :  { %v731_v37 = vadd.f32 %v730_v36, %v729_v35  ;;  %v751_v38 = vrot.slane %v750_v46, 2 }
 0x250   :  { %v732_v39 = vrot.slane %v731_v37, 1  ;;  %v752_v40 = vadd.f32 %v751_v38, %v750_v46 }
 0x252   :  { %v733_v62 = vadd.f32 %v732_v39, %v731_v37  ;;  %v753_v1 = vrot.slane %v752_v40, 1 }
 0x254   :  { %v754_v2 = vadd.f32 %v753_v1, %v752_v40  ;;  %v755_v42 = vmul.f32 %v733_v62, %v733_v62  ;;  %v759_v53 = vsub.f32 %v1522_v41, %v733_v62  ;;  %v758_v55 = vsub.f32 %v1524_v61, %v733_v62 }
 0x256   :  { %v756_v3 = vsub.f32 %v754_v2, %v755_v42 }
 0x258   :  { %v757_v4 = vmax.f32 %v756_v3, 0.0 }
 0x25a   :  { %v760_v43 = vadd.f32 1e-05, %v757_v4 }
 0x25c   :  { %1241 = vrsqrt.f32 %v760_v43  ;;  %vm767_vm5 = vweird.f32 %v760_v43 }
 0x262   :  { %v1242_v44 = vpop.eup %1241 }
 0x263   :  { %v762_v48 = vmul.f32 %v1242_v44, %v760_v43  ;;  %vm768_vm1 = vweird.f32 %v1242_v44 }
 0x264   :  { %vm769_vm6 = vmor %vm767_vm5, %vm768_vm1 }
 0x265   :  { %v763_v49 = vmul.f32 %v1242_v44, %v762_v48 }
 0x267   :  { %v764_v50 = vmul.f32 0.5, %v763_v49 }
 0x269   :  { %v765_v51 = vsub.f32 1.5, %v764_v50 }
 0x26b   :  { %v766_v52 = vmul.f32 %v1242_v44, %v765_v51 }
 0x26d   :  { %v770_v56 = vsel %vm769_vm6, %v1242_v44, %v766_v52 }
 0x26e   :  { %v772_v57 = vmul.f32 %v770_v56, %v759_v53  ;;  %v771_v41 = vmul.f32 %v770_v56, %v758_v55 }
 0x270   :  { %v775_v59 = vmul.f32 %v1234_v54, %v772_v57  ;;  %v774_v60 = vmul.f32 %v1234_v54, %v771_v41 }
 0x272   :  { %v778_v19 = vadd.f32 %v1235_v58, %v775_v59  ;;  %v777_v61 = vadd.f32 %v1235_v58, %v774_v60 }
 0x274   :  { %v780_v11 = vmax.f32 %v778_v19, 0.0  ;;  %v779_v63 = vmax.f32 %v777_v61, 0.0 }
 0x276   :  { %862 = vrot.lane.b32.xlu2 %v780_v11, %s1271_s29  ;;  %v867_v0 = vrot.slane %v780_v11, 2  ;;  %v855_v16 = vrot.slane %v779_v63, 2  ;;  %853 = vst.msk [vmem:[#allocation5 + $0x8] sm:$0x3] %vm852_vm7, %v779_v63 }
 0x278   :  { %868 = vrot.lane.b32.xlu0 %v867_v0, %s1272_s30  ;;  %856 = vrot.lane.b32.xlu1 %v855_v16, %s1270_s28 }
 0x2ca   :  { %v847_v25 = vpop.f32.mrf.mxu2 }
 0x2cb   :  { %v848_v6 = vadd.f32 %v1236_v5, %v847_v25 }
 0x2cd   :  { %v850_v47 = vmax.f32 %v848_v6, 0.0 }
 0x2cf   :  { %851 = vst [vmem:[#allocation5] sm:$0x3] %v850_v47 }
 0x2d0   :  { %v863_v8 = vpop.permute.xlu2 %862 }
 0x2ea   :  { %v857_v7 = vpop.permute.xlu1 %856  ;;  %v869_v12 = vpop.permute.xlu0 %868 }
 0x2eb   :  { %860 = vst.msk [vmem:[#allocation5 + $0x8] sm:$0x3] %vm859_vm8, %v857_v7 }
 0x2ec   :  { %866 = vst.msk [vmem:[#allocation5 + $0x8] sm:$0x3] %vm865_vm9, %v863_v8 }
 0x2ed   :  { %872 = vst.msk [vmem:[#allocation5 + $0x8] sm:$0x3] %vm871_vm10, %v869_v12 }
 0x2ee   :  { %1268 = dma.done.wait [#allocation3], 12800 }
 0x2ef   :  { %1269 = vsyncadd [#allocation3], 4294954496  ;;  %v942_v13 = vld [vmem:[#allocation2 + $0x1f8] sm:$0xff]  ;;  %v940_v14 = vld [vmem:[#allocation2 + $0x1e8] sm:$0xff]  ;;  %vm1109_vm11 = vcmask 1041408  }
 0x2f0   :  { %v909_v15 = vld [vmem:[#allocation2 + $0xf0] sm:$0xff]  ;;  %1010 = vmatpush.msra.mxu2 %v942_v13  ;;  %v910_v17 = vld [vmem:[#allocation2 + $0xf8] sm:$0xff]  ;;  %v907_v18 = vld [vmem:[#allocation2 + $0xe0] sm:$0xff] }
 0x2f1   :  { %950 = vmatpush.msrb.mxu3 %v909_v15  ;;  %990 = vmatpush.msra.mxu1 %v910_v17  ;;  %v938_v20 = vld [vmem:[#allocation2 + $0x1d8] sm:$0xff]  ;;  %v908_v9 = vld [vmem:[#allocation2 + $0xe8] sm:$0xff]  ;;  %v905_v21 = vld [vmem:[#allocation2 + $0xd0] sm:$0xff] }
 0x2f2   :  { %1011 = vmatpush.msra.mxu2 %v940_v14  ;;  %v906_v23 = vld [vmem:[#allocation2 + $0xd8] sm:$0xff]  ;;  %v936_v22 = vld [vmem:[#allocation2 + $0x1c8] sm:$0xff]  ;;  %v903_v24 = vld [vmem:[#allocation2 + $0xc0] sm:$0xff] }
 0x2f3   :  { %951 = vmatpush.msrb.mxu3 %v907_v18  ;;  %991 = vmatpush.msra.mxu1 %v908_v9  ;;  %v904_v26 = vld [vmem:[#allocation2 + $0xc8] sm:$0xff]  ;;  %v941_v27 = vld [vmem:[#allocation2 + $0x1f0] sm:$0xff]  ;;  %v934_v28 = vld [vmem:[#allocation2 + $0x1b8] sm:$0xff] }
 0x2f4   :  { %1012 = vmatpush.msra.mxu2 %v938_v20  ;;  %v901_v29 = vld [vmem:[#allocation2 + $0xb0] sm:$0xff]  ;;  %970 = vmatpush.msrb.mxu0 %v941_v27  ;;  %v939_v10 = vld [vmem:[#allocation2 + $0x1e0] sm:$0xff]  ;;  %v902_v30 = vld [vmem:[#allocation2 + $0xb8] sm:$0xff] }
 0x2f5   :  { %952 = vmatpush.msrb.mxu3 %v905_v21  ;;  %992 = vmatpush.msra.mxu1 %v906_v23  ;;  %v937_v31 = vld [vmem:[#allocation2 + $0x1d0] sm:$0xff]  ;;  %v932_v32 = vld [vmem:[#allocation2 + $0x1a8] sm:$0xff]  ;;  %v899_v33 = vld [vmem:[#allocation2 + $0xa0] sm:$0xff] }
 0x2f6   :  { %1013 = vmatpush.msra.mxu2 %v936_v22  ;;  %971 = vmatpush.msrb.mxu0 %v939_v10  ;;  %v900_v34 = vld [vmem:[#allocation2 + $0xa8] sm:$0xff]  ;;  %v935_v35 = vld [vmem:[#allocation2 + $0x1c0] sm:$0xff]  ;;  %v930_v45 = vld [vmem:[#allocation2 + $0x198] sm:$0xff] }
 0x2f7   :  { %953 = vmatpush.msrb.mxu3 %v903_v24  ;;  %993 = vmatpush.msra.mxu1 %v904_v26  ;;  %v897_v36 = vld [vmem:[#allocation2 + $0x90] sm:$0xff]  ;;  %v898_v46 = vld [vmem:[#allocation2 + $0x98] sm:$0xff]  ;;  %v928_v38 = vld [vmem:[#allocation2 + $0x188] sm:$0xff] }
 0x2f8   :  { %1014 = vmatpush.msra.mxu2 %v934_v28  ;;  %972 = vmatpush.msrb.mxu0 %v937_v31  ;;  %v933_v37 = vld [vmem:[#allocation2 + $0x1b0] sm:$0xff]  ;;  %v895_v39 = vld [vmem:[#allocation2 + $0x80] sm:$0xff]  ;;  %v896_v40 = vld [vmem:[#allocation2 + $0x88] sm:$0xff] }
 0x2f9   :  { %954 = vmatpush.msrb.mxu3 %v901_v29  ;;  %994 = vmatpush.msra.mxu1 %v902_v30  ;;  %v931_v62 = vld [vmem:[#allocation2 + $0x1a0] sm:$0xff]  ;;  %v926_v1 = vld [vmem:[#allocation2 + $0x178] sm:$0xff]  ;;  %v893_v2 = vld [vmem:[#allocation2 + $0x70] sm:$0xff] }
 0x2fa   :  { %1015 = vmatpush.msra.mxu2 %v932_v32  ;;  %973 = vmatpush.msrb.mxu0 %v935_v35  ;;  %v894_v42 = vld [vmem:[#allocation2 + $0x78] sm:$0xff]  ;;  %v929_v3 = vld [vmem:[#allocation2 + $0x190] sm:$0xff]  ;;  %v924_v4 = vld [vmem:[#allocation2 + $0x168] sm:$0xff] }
 0x2fb   :  { %955 = vmatpush.msrb.mxu3 %v899_v33  ;;  %995 = vmatpush.msra.mxu1 %v900_v34  ;;  %v891_v43 = vld [vmem:[#allocation2 + $0x60] sm:$0xff]  ;;  %v892_v44 = vld [vmem:[#allocation2 + $0x68] sm:$0xff]  ;;  %v922_v49 = vld [vmem:[#allocation2 + $0x158] sm:$0xff] }
 0x2fc   :  { %1016 = vmatpush.msra.mxu2 %v930_v45  ;;  %974 = vmatpush.msrb.mxu0 %v933_v37  ;;  %v927_v48 = vld [vmem:[#allocation2 + $0x180] sm:$0xff]  ;;  %v889_v50 = vld [vmem:[#allocation2 + $0x50] sm:$0xff]  ;;  %v890_v51 = vld [vmem:[#allocation2 + $0x58] sm:$0xff] }
 0x2fd   :  { %956 = vmatpush.msrb.mxu3 %v897_v36  ;;  %996 = vmatpush.msra.mxu1 %v898_v46  ;;  %v925_v52 = vld [vmem:[#allocation2 + $0x170] sm:$0xff]  ;;  %v920_v53 = vld [vmem:[#allocation2 + $0x148] sm:$0xff]  ;;  %v887_v54 = vld [vmem:[#allocation2 + $0x40] sm:$0xff] }
 0x2fe   :  { %1017 = vmatpush.msra.mxu2 %v928_v38  ;;  %975 = vmatpush.msrb.mxu0 %v931_v62  ;;  %v888_v55 = vld [vmem:[#allocation2 + $0x48] sm:$0xff]  ;;  %v923_v56 = vld [vmem:[#allocation2 + $0x160] sm:$0xff]  ;;  %v918_v57 = vld [vmem:[#allocation2 + $0x138] sm:$0xff] }
 0x2ff   :  { %957 = vmatpush.msrb.mxu3 %v895_v39  ;;  %997 = vmatpush.msra.mxu1 %v896_v40  ;;  %v885_v58 = vld [vmem:[#allocation2 + $0x30] sm:$0xff]  ;;  %v886_v41 = vld [vmem:[#allocation2 + $0x38] sm:$0xff]  ;;  %v916_v60 = vld [vmem:[#allocation2 + $0x128] sm:$0xff] }
 0x300   :  { %1018 = vmatpush.msra.mxu2 %v926_v1  ;;  %976 = vmatpush.msrb.mxu0 %v929_v3  ;;  %v921_v59 = vld [vmem:[#allocation2 + $0x150] sm:$0xff]  ;;  %v883_v19 = vld [vmem:[#allocation2 + $0x20] sm:$0xff]  ;;  %v884_v61 = vld [vmem:[#allocation2 + $0x28] sm:$0xff] }
 0x301   :  { %958 = vmatpush.msrb.mxu3 %v893_v2  ;;  %998 = vmatpush.msra.mxu1 %v894_v42  ;;  %v919_v11 = vld [vmem:[#allocation2 + $0x140] sm:$0xff]  ;;  %v914_v63 = vld [vmem:[#allocation2 + $0x118] sm:$0xff]  ;;  %v881_v0 = vld [vmem:[#allocation2 + $0x10] sm:$0xff] }
 0x302   :  { %1019 = vmatpush.msra.mxu2 %v924_v4  ;;  %977 = vmatpush.msrb.mxu0 %v927_v48  ;;  %v882_v16 = vld [vmem:[#allocation2 + $0x18] sm:$0xff]  ;;  %v917_v5 = vld [vmem:[#allocation2 + $0x130] sm:$0xff]  ;;  %v912_v25 = vld [vmem:[#allocation2 + $0x108] sm:$0xff] }
 0x303   :  { %959 = vmatpush.msrb.mxu3 %v891_v43  ;;  %999 = vmatpush.msra.mxu1 %v892_v44  ;;  %v879_v6 = vld [vmem:[#allocation2] sm:$0xff]  ;;  %v878_v47 = vld [vmem:[#allocation5 + $0x8] sm:$0x3]  ;;  %v880_v7 = vld [vmem:[#allocation2 + $0x8] sm:$0xff] }
 0x304   :  { %1020 = vmatpush.msra.mxu2 %v922_v49  ;;  %978 = vmatpush.msrb.mxu0 %v925_v52  ;;  %v877_v8 = vld [vmem:[#allocation5] sm:$0x3]  ;;  %v915_v12 = vld [vmem:[#allocation2 + $0x120] sm:$0xff]  ;;  %v1063_v13 = vld [vmem:[#allocation2 + $0x308] sm:$0xff] }
 0x305   :  { %960 = vmatpush.msrb.mxu3 %v889_v50  ;;  %1000 = vmatpush.msra.mxu1 %v890_v51  ;;  %v913_v14 = vld [vmem:[#allocation2 + $0x110] sm:$0xff]  ;;  %v1062_v15 = vld [vmem:[#allocation2 + $0x2f8] sm:$0xff]  ;;  %v911_v17 = vld [vmem:[#allocation2 + $0x100] sm:$0xff] }
 0x306   :  { %1021 = vmatpush.msra.mxu2 %v920_v53  ;;  %979 = vmatpush.msrb.mxu0 %v923_v56  ;;  %v1061_v18 = vld [vmem:[#allocation2 + $0x2e8] sm:$0xff]  ;;  %v1060_v20 = vld [vmem:[#allocation2 + $0x2d8] sm:$0xff]  ;;  %v1047_v9 = vld [vmem:[#allocation2 + $0x300] sm:$0xff] }
 0x307   :  { %961 = vmatpush.msrb.mxu3 %v887_v54  ;;  %1001 = vmatpush.msra.mxu1 %v888_v55  ;;  %v1059_v21 = vld [vmem:[#allocation2 + $0x2c8] sm:$0xff]  ;;  %v1046_v23 = vld [vmem:[#allocation2 + $0x2f0] sm:$0xff]  ;;  %v1058_v22 = vld [vmem:[#allocation2 + $0x2b8] sm:$0xff] }
 0x308   :  { %1022 = vmatpush.msra.mxu2 %v918_v57  ;;  %980 = vmatpush.msrb.mxu0 %v921_v59  ;;  %v1045_v24 = vld [vmem:[#allocation2 + $0x2e0] sm:$0xff]  ;;  %v1057_v26 = vld [vmem:[#allocation2 + $0x2a8] sm:$0xff]  ;;  %v1044_v27 = vld [vmem:[#allocation2 + $0x2d0] sm:$0xff] }
 0x309   :  { %962 = vmatpush.msrb.mxu3 %v885_v58  ;;  %1002 = vmatpush.msra.mxu1 %v886_v41  ;;  %v1056_v28 = vld [vmem:[#allocation2 + $0x298] sm:$0xff]  ;;  %v1043_v29 = vld [vmem:[#allocation2 + $0x2c0] sm:$0xff]  ;;  %v1055_v10 = vld [vmem:[#allocation2 + $0x288] sm:$0xff] }
 0x30a   :  { %1023 = vmatpush.msra.mxu2 %v916_v60  ;;  %981 = vmatpush.msrb.mxu0 %v919_v11  ;;  %v1042_v30 = vld [vmem:[#allocation2 + $0x2b0] sm:$0xff]  ;;  %v1054_v31 = vld [vmem:[#allocation2 + $0x278] sm:$0xff]  ;;  %v1041_v32 = vld [vmem:[#allocation2 + $0x2a0] sm:$0xff] }
 0x30b   :  { %963 = vmatpush.msrb.mxu3 %v883_v19  ;;  %1003 = vmatpush.msra.mxu1 %v884_v61  ;;  %v1053_v33 = vld [vmem:[#allocation2 + $0x268] sm:$0xff]  ;;  %v1040_v34 = vld [vmem:[#allocation2 + $0x290] sm:$0xff]  ;;  %v1052_v35 = vld [vmem:[#allocation2 + $0x258] sm:$0xff] }
 0x30c   :  { %1024 = vmatpush.msra.mxu2 %v914_v63  ;;  %982 = vmatpush.msrb.mxu0 %v917_v5  ;;  %v1039_v45 = vld [vmem:[#allocation2 + $0x280] sm:$0xff]  ;;  %v1051_v36 = vld [vmem:[#allocation2 + $0x248] sm:$0xff]  ;;  %v1038_v46 = vld [vmem:[#allocation2 + $0x270] sm:$0xff] }
 0x30d   :  { %964 = vmatpush.msrb.mxu3 %v881_v0  ;;  %1004 = vmatpush.msra.mxu1 %v882_v16  ;;  %v1050_v37 = vld [vmem:[#allocation2 + $0x238] sm:$0xff]  ;;  %v1037_v38 = vld [vmem:[#allocation2 + $0x260] sm:$0xff]  ;;  %v1049_v39 = vld [vmem:[#allocation2 + $0x228] sm:$0xff]  ;;  %v1275_v16 = vmov 0  }
 0x30e   :  { %1025 = vmatpush.msra.mxu2 %v912_v25  ;;  %983 = vmatpush.msrb.mxu0 %v915_v12  ;;  %v1036_v40 = vld [vmem:[#allocation2 + $0x250] sm:$0xff]  ;;  %v1048_v62 = vld [vmem:[#allocation2 + $0x218] sm:$0xff]  ;;  %v1035_v1 = vld [vmem:[#allocation2 + $0x240] sm:$0xff] }
 0x30f   :  { %965 = vmatpush.msrb.mxu3 %v879_v6  ;;  %1026 = vmatmul.f32.vlgmr.msra.gmra.mxu2 %v878_v47  ;;  %v1034_v2 = vld [vmem:[#allocation2 + $0x230] sm:$0xff]  ;;  %v1033_v42 = vld [vmem:[#allocation2 + $0x220] sm:$0xff]  ;;  %v1107_v61 = vld [vmem:[#allocation2 + $0x318] ss:$0 sm:$0xff] }
 0x310   :  { %1005 = vmatpush.msra.mxu1 %v880_v7  ;;  %966 = vmatmul.f32.vlgmr.msrb.gmra.mxu3 %v877_v8  ;;  %v1032_v3 = vld [vmem:[#allocation2 + $0x210] sm:$0xff]  ;;  %v944_v4 = vld [vmem:[#allocation2 + $0x200] ss:$8 sm:$0x3] }
 0x311   :  { %1006 = vmatmul.f32.vlgmr.msra.gmra.mxu1 %v877_v8  ;;  %1064 = vmatpush.msra.mxu3 %v1063_v13  ;;  %v947_v43 = vperm.slane %v944_v4, 1  ;;  %v946_v49 = vperm.slane %v944_v4, 0  ;;  %v1104_v59 = vld [vmem:[#allocation2 + $0x310] ss:$0 sm:$0xff]  ;;  %v1113_v5 = vld [vmem:[#allocation2 + $0x311] ss:$0 sm:$0xff] }
 0x312   :  { %984 = vmatpush.msrb.mxu0 %v913_v14  ;;  %1243 = vset.pattern.permute.xlu0 %v1275_v16 }
 0x313   :  { %1065 = vmatpush.msra.mxu3 %v1062_v15 }
 0x314   :  { %985 = vmatpush.msrb.mxu0 %v911_v17 }
 0x315   :  { %1066 = vmatpush.msra.mxu3 %v1061_v18  ;;  %986 = vmatmul.f32.vlgmr.msrb.gmra.mxu0 %v878_v47 }
 0x316   :  { %1084 = vmatpush.msra.mxu0 %v1047_v9 }
 0x317   :  { %1067 = vmatpush.msra.mxu3 %v1060_v20 }
 0x318   :  { %1085 = vmatpush.msra.mxu0 %v1046_v23 }
 0x319   :  { %1068 = vmatpush.msra.mxu3 %v1059_v21 }
 0x31a   :  { %1086 = vmatpush.msra.mxu0 %v1045_v24 }
 0x31b   :  { %1069 = vmatpush.msra.mxu3 %v1058_v22 }
 0x31c   :  { %1087 = vmatpush.msra.mxu0 %v1044_v27 }
 0x31d   :  { %1070 = vmatpush.msra.mxu3 %v1057_v26 }
 0x31e   :  { %1088 = vmatpush.msra.mxu0 %v1043_v29 }
 0x31f   :  { %1071 = vmatpush.msra.mxu3 %v1056_v28 }
 0x320   :  { %1089 = vmatpush.msra.mxu0 %v1042_v30 }
 0x321   :  { %1072 = vmatpush.msra.mxu3 %v1055_v10 }
 0x322   :  { %1090 = vmatpush.msra.mxu0 %v1041_v32 }
 0x323   :  { %1073 = vmatpush.msra.mxu3 %v1054_v31 }
 0x324   :  { %1091 = vmatpush.msra.mxu0 %v1040_v34 }
 0x325   :  { %1074 = vmatpush.msra.mxu3 %v1053_v33 }
 0x326   :  { %1092 = vmatpush.msra.mxu0 %v1039_v45 }
 0x327   :  { %1075 = vmatpush.msra.mxu3 %v1052_v35 }
 0x328   :  { %1093 = vmatpush.msra.mxu0 %v1038_v46 }
 0x329   :  { %1076 = vmatpush.msra.mxu3 %v1051_v36 }
 0x32a   :  { %1094 = vmatpush.msra.mxu0 %v1037_v38 }
 0x32b   :  { %1077 = vmatpush.msra.mxu3 %v1050_v37 }
 0x32c   :  { %1095 = vmatpush.msra.mxu0 %v1036_v40 }
 0x32d   :  { %1078 = vmatpush.msra.mxu3 %v1049_v39 }
 0x32e   :  { %1096 = vmatpush.msra.mxu0 %v1035_v1 }
 0x32f   :  { %1079 = vmatpush.msra.mxu3 %v1048_v62 }
 0x330   :  { %1097 = vmatpush.msra.mxu0 %v1034_v2 }
 0x332   :  { %1098 = vmatpush.msra.mxu0 %v1033_v42 }
 0x334   :  { %1099 = vmatpush.msra.mxu0 %v1032_v3 }
 0x38e   :  { %v1007_v44 = vpop.f32.mrf.mxu1 }
 0x38f   :  { %v1008_v48 = vadd.f32 %v1007_v44, %v947_v43 }
 0x392   :  { %v1027_v50 = vpop.f32.mrf.mxu2  ;;  %v987_v53 = vpop.f32.mrf.mxu0 }
 0x393   :  { %v1028_v51 = vadd.f32 %v1027_v50, %v1008_v48  ;;  %v967_v52 = vpop.f32.mrf.mxu3 }
 0x394   :  { %v968_v54 = vadd.f32 %v967_v52, %v946_v49 }
 0x395   :  { %v1031_v55 = vmax.f32 %v1028_v51, 0.0 }
 0x396   :  { %v988_v56 = vadd.f32 %v987_v53, %v968_v54 }
 0x397   :  { %1080 = vmatmul.f32.vlgmr.msra.gmra.mxu3 %v1031_v55 }
 0x398   :  { %v1030_v57 = vmax.f32 %v988_v56, 0.0 }
 0x39a   :  { %1100 = vmatmul.f32.vlgmr.msra.gmra.mxu0 %v1030_v57 }
 0x417   :  { %v1101_v58 = vpop.f32.mrf.mxu0 }
 0x41a   :  { %v1081_v41 = vpop.f32.mrf.mxu3 }
 0x41b   :  { %v1102_v60 = vadd.f32 %v1101_v58, %v1081_v41 }
 0x41d   :  { %v1105_v19 = vadd.f32 %v1104_v59, %v1102_v60 }
 0x41f   :  { %v1106_v11 = vmax.f32 %v1105_v19, 0.0 }
 0x421   :  { %v1108_v63 = vmul.f32 %v1107_v61, %v1106_v11 }
 0x423   :  { %v1110_v0 = vsel %vm1109_vm11, %v1108_v63, 0.0 }
 0x424   :  { %1111 = vadd.xlane.f32.xlu0 %v1110_v0 }
 0x497   :  { %v1112_v25 = vpop.xlane.xlu0 %1111 }
 0x498   :  { %v1114_v6 = vadd.f32 %v1113_v5, %v1112_v25 }
 0x49a   :  { %v1115_v47 = vmax.f32 %v1114_v6, 0.0 }
 0x49c   :  { %1118 = vperm.xlu0 %1243, %v1115_v47  }
 0x50e   :  { %v1119_v7 = vpop.permute.xlu0 %1118 }
 0x50f   :  { %1121 = vst [vmem:[%s1596_s3] sm:$0x3] %v1119_v7 }
 0x510   :  { %1126 = vsyncmov [#allocation3] }
 0x513   :  { %s1127_s29 = vpop.sfrf %1126 }
 0x514   :  { %p1171_p0 = scmp.ne.s32.totalorder %s1127_s29, 0 }
 0x516   :  { %1131 = shalt.err (%p1171_p0)  }

</bundles_post_ra>
